<compile_context>
chip_gen: v5e
topology: v5e:2x2
jax: 0.10.0
libtpu: 0.0.40
codegen_flags: <defaults>
</compile_context>

<pallas_src>
import functools
import math

import jax
import jax.numpy as jnp
from jax.experimental import pallas as pl
from jax.experimental.pallas import tpu as pltpu


# ----------------------------- Pallas kernel ---------------------------------
def _msef_kernel(x_ref, aff_ref, dw_ref, mask_ref, pw_ref, eca_ref,
                 ca1_ref, ca2_ref, out_ref, cw_ref, *, H, W):
    # x_ref block: (1, C, HW) -- channels on sublanes, spatial on lanes.
    C = x_ref.shape[1]
    HW = H * W
    xb = x_ref[0]                                          # (C, HW) f32
    aff = aff_ref[...]                                     # (C, 4): lnw,lnb,gamma,beta

    # --- LayerNorm over channels (per pixel) + affine + gamma/beta ------------
    mean = jnp.mean(xb, axis=0, keepdims=True)             # (1, HW)
    xc = xb - mean
    var = jnp.mean(xc * xc, axis=0, keepdims=True)
    inv = jax.lax.rsqrt(var + 1e-5)                        # nn.LayerNorm eps
    xn = xc * inv
    xn = xn * aff[:, 0:1] + aff[:, 1:2]                    # LayerNorm weight/bias
    xn = xn * aff[:, 2:3] + aff[:, 3:4]                    # module gamma/beta

    # --- depthwise 3x3 (padding=1, groups=C) via lane rolls + boundary masks --
    dw_w = dw_ref[...]                                     # (C, 9)
    mask = mask_ref[...]                                   # (9, HW) 1/0 validity
    acc = xn * dw_w[:, 4:5]                                # center tap (dy=0, dx=0)
    for dy in (-1, 0, 1):
        for dx in (-1, 0, 1):
            if dy == 0 and dx == 0:
                continue
            k = (dy + 1) * 3 + (dx + 1)
            d = dy * W + dx
            # rolled[c, p] = xn[c, (p + d) mod HW]; mask kills wrapped positions.
            rolled = pltpu.roll(xn, (-d) % HW, 1)
            acc = acc + (rolled * mask[k:k + 1, :]) * dw_w[:, k:k + 1]

    # --- pointwise 1x1 conv (no bias): (C_out, C_in) @ (C_in, HW) on the MXU --
    x1 = jnp.dot(pw_ref[...], acc, preferred_element_type=jnp.float32)  # (C, HW)

    # --- ECA: global avg pool -> band conv1d over channels -> sigmoid gate ----
    pooled = jnp.mean(xn, axis=1, keepdims=True)           # (C, 1)
    ew = eca_ref[...]                                      # (1, ksize)
    ksize = ew.shape[1]
    pad = (ksize - 1) // 2
    gpre = jnp.zeros((C, 1), jnp.float32)
    for j in range(ksize):
        off = j - pad
        if off == 0:
            sh = pooled
        elif off > 0:
            sh = jnp.concatenate(
                [pooled[off:, :], jnp.zeros((off, 1), jnp.float32)], axis=0)
        else:
            sh = jnp.concatenate(
                [jnp.zeros((-off, 1), jnp.float32), pooled[:C + off, :]], axis=0)
        gpre = gpre + sh * ew[:, j:j + 1]
    gate = jax.nn.sigmoid(gpre)                            # (C, 1)
    x2 = xn * gate

    # --- fuse + LeakyReLU(0.2) ------------------------------------------------
    s = x1 + x2
    xf = jnp.where(s >= 0, s, 0.2 * s)                     # (C, HW)

    # --- ColorAttention: C -> C//8 (ReLU) -> 3 (sigmoid) * 2, on the VPU ------
    ca1 = ca1_ref[...]                                     # (C, Cr)
    ca2 = ca2_ref[...]                                     # (3, Cr)
    cr = ca1.shape[1]
    cw_pre = jnp.zeros((3, HW), jnp.float32)
    for r in range(cr):
        h1_r = jnp.maximum(
            jnp.sum(ca1[:, r:r + 1] * xf, axis=0, keepdims=True), 0.0)  # (1, HW)
        cw_pre = cw_pre + ca2[:, r:r + 1] * h1_r           # (3,1)*(1,HW) -> (3,HW)
    cw = jax.nn.sigmoid(cw_pre) * 2.0

    # --- residual + outputs (lane-dense stores) -------------------------------
    out_ref[0] = xf + xb
    cw_ref[0] = cw


# ----------------------------- wrapper ---------------------------------------
def msef_block(x_nchw, params):
    B, C, H, W = x_nchw.shape
    HW = H * W
    x = x_nchw.reshape(B, C, HW).astype(jnp.float32)       # NCHW-native, free reshape

    # Kernel-layout parameters.
    aff = jnp.stack([params["ln_w"], params["ln_b"],
                     params["gamma"], params["beta"]], axis=1).astype(jnp.float32)
    dw = params["dw"].reshape(C, 9).astype(jnp.float32)    # (C, 9), k = ky*3 + kx
    pw = params["pw"].astype(jnp.float32)                  # (C_out, C_in)
    eca = params["eca_w"].reshape(1, -1).astype(jnp.float32)   # (1, ksize)
    ca1_t = params["ca1"].T.astype(jnp.float32)            # (C, Cr)
    ca2 = params["ca2"].astype(jnp.float32)                # (3, Cr)

    # Precomputed 1/0 boundary masks for the 9 depthwise taps (static in H, W).
    hh = jnp.arange(H)[:, None]
    ww = jnp.arange(W)[None, :]
    rows = []
    for dy in (-1, 0, 1):
        for dx in (-1, 0, 1):
            m = ((hh + dy >= 0) & (hh + dy < H) & (ww + dx >= 0) & (ww + dx < W))
            rows.append(m.reshape(-1))
    dw_mask = jnp.stack(rows, axis=0).astype(jnp.float32)  # (9, HW)

    param_arrays = [aff, dw, dw_mask, pw, eca, ca1_t, ca2]

    def full_spec(arr):
        nd = arr.ndim
        return pl.BlockSpec(arr.shape, lambda b, _nd=nd: (0,) * _nd)

    in_specs = [pl.BlockSpec((1, C, HW), lambda b: (b, 0, 0))]
    in_specs += [full_spec(p) for p in param_arrays]

    kernel = functools.partial(_msef_kernel, H=H, W=W)

    out, cw = pl.pallas_call(
        kernel,
        out_shape=(jax.ShapeDtypeStruct((B, C, HW), jnp.float32),
                   jax.ShapeDtypeStruct((B, 3, HW), jnp.float32)),
        grid_spec=pltpu.PrefetchScalarGridSpec(
            num_scalar_prefetch=0,
            grid=(B,),
            in_specs=in_specs,
            out_specs=[pl.BlockSpec((1, C, HW), lambda b: (b, 0, 0)),
                       pl.BlockSpec((1, 3, HW), lambda b: (b, 0, 0))]),
        compiler_params=pltpu.CompilerParams(
            dimension_semantics=("parallel",),     # no cross-batch accumulator
            vmem_limit_bytes=32 * 1024 * 1024),
    )(x, *param_arrays)

    return out.reshape(B, C, H, W), cw.reshape(B, 3, H, W)


# -------------------- deterministic parameter construction -------------------
def make_params(key, C):
    ks = jax.random.split(key, 5)
    Cr = C // 8                                           # ColorAttention reduction=8

    # ECA conv1d kernel size from the module formula (gamma=2, b=1).
    ksize = int(abs((math.log2(C) + 1) / 2))
    ksize = ksize if ksize % 2 else ksize + 1

    dw = jax.random.normal(ks[0], (C, 3, 3), jnp.float32) * math.sqrt(2.0 / 9.0)
    pw = jax.random.normal(ks[1], (C, C), jnp.float32) * math.sqrt(2.0 / C)
    eca_w = jax.random.normal(ks[2], (ksize,), jnp.float32) * math.sqrt(1.0 / ksize)
    ca1 = jax.random.normal(ks[3], (Cr, C), jnp.float32) * math.sqrt(2.0 / C)
    ca2 = jax.random.normal(ks[4], (3, Cr), jnp.float32) * math.sqrt(2.0 / max(Cr, 1))

    return {
        "ln_w": jnp.ones((C,), jnp.float32),
        "ln_b": jnp.zeros((C,), jnp.float32),
        "gamma": jnp.ones((C,), jnp.float32),
        "beta": jnp.zeros((C,), jnp.float32),
        "dw": dw,         # depthwise (C, 3, 3)
        "pw": pw,         # pointwise (C_out, C_in)
        "eca_w": eca_w,   # conv1d taps (ksize,)
        "ca1": ca1,       # (Cr, C)
        "ca2": ca2,       # (3, Cr)
    }


# ----------------------------- pure-JAX reference -----------------------------
def msef_reference(x_nchw, P):
    B, C, H, W = x_nchw.shape
    x = jnp.transpose(x_nchw, (0, 2, 3, 1)).astype(jnp.float32)   # NHWC
    mean = x.mean(-1, keepdims=True)
    var = ((x - mean) ** 2).mean(-1, keepdims=True)
    xn = (x - mean) / jnp.sqrt(var + 1e-5) * P["ln_w"] + P["ln_b"]
    xn = xn * P["gamma"] + P["beta"]

    xp = jnp.pad(xn, ((0, 0), (1, 1), (1, 1), (0, 0)))
    dwr = jnp.transpose(P["dw"], (1, 2, 0))                        # (3,3,C)
    dwa = jnp.zeros_like(xn)
    for ky in range(3):
        for kx in range(3):
            dwa = dwa + xp[:, ky:ky + H, kx:kx + W, :] * dwr[ky, kx]
    x1 = dwa @ P["pw"].T

    k = P["eca_w"].shape[0]
    pad = (k - 1) // 2
    pooled = xn.mean(axis=(1, 2))                                  # (B, C)
    pooled_p = jnp.pad(pooled, ((0, 0), (pad, pad)))
    gate_pre = sum(P["eca_w"][j] * pooled_p[:, j:j + C] for j in range(k))
    gate = jax.nn.sigmoid(gate_pre)
    x2 = xn * gate[:, None, None, :]

    s = x1 + x2
    xf = jnp.where(s >= 0, s, 0.2 * s)
    h1 = jnp.maximum(xf @ P["ca1"].T, 0.0)
    cw = jax.nn.sigmoid(h1 @ P["ca2"].T) * 2.0
    out = xf + x
    return (jnp.transpose(out, (0, 3, 1, 2)), jnp.transpose(cw, (0, 3, 1, 2)))


if __name__ == "__main__":
    B, C, H, W = 2, 16, 16, 16   # filters=16 (>= 8 so ColorAttention C//8 >= 1)
    key = jax.random.PRNGKey(0)
    kx_, kp = jax.random.split(key)
    x = jax.random.normal(kx_, (B, C, H, W), jnp.float32)
    params = make_params(kp, C)

    x_out, color_weights = msef_block(x, params)
    jax.block_until_ready((x_out, color_weights))

    ref_out, ref_cw = msef_reference(x, params)
    assert x_out.shape == (B, C, H, W) and color_weights.shape == (B, 3, H, W)
    assert jnp.allclose(x_out, ref_out, atol=1e-4, rtol=1e-4)
    assert jnp.allclose(color_weights, ref_cw, atol=1e-4, rtol=1e-4)

    print("KERNEL_OK")
</pallas_src>

<mosaic_0001>
module attributes {stable_mosaic.version = 11 : i64} {
  func.func @_msef_kernel(%arg0: i32, %arg1: memref<1x16x256xf32, #tpu.memory_space<vmem>>, %arg2: memref<16x4xf32, #tpu.memory_space<vmem>>, %arg3: memref<16x9xf32, #tpu.memory_space<vmem>>, %arg4: memref<9x256xf32, #tpu.memory_space<vmem>>, %arg5: memref<16x16xf32, #tpu.memory_space<vmem>>, %arg6: memref<1x3xf32, #tpu.memory_space<vmem>>, %arg7: memref<16x2xf32, #tpu.memory_space<vmem>>, %arg8: memref<3x2xf32, #tpu.memory_space<vmem>>, %arg9: memref<1x16x256xf32, #tpu.memory_space<vmem>>, %arg10: memref<1x3x256xf32, #tpu.memory_space<vmem>>) attributes {dimension_semantics = [#tpu.dimension_semantics<parallel>], iteration_bounds = array<i64: 2>, scalar_prefetch = 0 : i64, scratch_operands = 0 : i64, tpu.core_type = #tpu.core_type<tc>, window_params = [{transform_indices = @transform_0, window_bounds = array<i64: 1, 16, 256>}, {pipeline_mode = #tpu.pipeline_mode<synchronous>, transform_indices = @transform_1, window_bounds = array<i64: 16, 4>}, {pipeline_mode = #tpu.pipeline_mode<synchronous>, transform_indices = @transform_2, window_bounds = array<i64: 16, 9>}, {pipeline_mode = #tpu.pipeline_mode<synchronous>, transform_indices = @transform_3, window_bounds = array<i64: 9, 256>}, {pipeline_mode = #tpu.pipeline_mode<synchronous>, transform_indices = @transform_4, window_bounds = array<i64: 16, 16>}, {pipeline_mode = #tpu.pipeline_mode<synchronous>, transform_indices = @transform_5, window_bounds = array<i64: 1, 3>}, {pipeline_mode = #tpu.pipeline_mode<synchronous>, transform_indices = @transform_6, window_bounds = array<i64: 16, 2>}, {pipeline_mode = #tpu.pipeline_mode<synchronous>, transform_indices = @transform_7, window_bounds = array<i64: 3, 2>}, {transform_indices = @transform_8, window_bounds = array<i64: 1, 16, 256>}, {transform_indices = @transform_9, window_bounds = array<i64: 1, 3, 256>}]} {
    %c0 = arith.constant 0 : index
    %c0_0 = arith.constant 0 : index
    %c0_1 = arith.constant 0 : index
    %0 = vector.load %arg1[%c0, %c0_0, %c0_1] : memref<1x16x256xf32, #tpu.memory_space<vmem>>, vector<1x16x256xf32>
    %1 = vector.shape_cast %0 : vector<1x16x256xf32> to vector<16x256xf32>
    %c0_2 = arith.constant 0 : index
    %c0_3 = arith.constant 0 : index
    %2 = vector.load %arg2[%c0_2, %c0_3] : memref<16x4xf32, #tpu.memory_space<vmem>>, vector<16x4xf32>
    %cst = arith.constant dense<0.000000e+00> : vector<256xf32>
    %3 = vector.multi_reduction <add>, %1, %cst [0] : vector<16x256xf32> to vector<256xf32>
    %4 = vector.shape_cast %3 : vector<256xf32> to vector<1x256xf32>
    %cst_4 = arith.constant 1.600000e+01 : f32
    %5 = vector.broadcast %cst_4 : f32 to vector<1x256xf32>
    %6 = arith.divf %4, %5 : vector<1x256xf32>
    %7 = vector.broadcast %6 : vector<1x256xf32> to vector<16x256xf32>
    %8 = arith.subf %1, %7 : vector<16x256xf32>
    %9 = arith.mulf %8, %8 : vector<16x256xf32>
    %cst_5 = arith.constant dense<0.000000e+00> : vector<256xf32>
    %10 = vector.multi_reduction <add>, %9, %cst_5 [0] : vector<16x256xf32> to vector<256xf32>
    %11 = vector.shape_cast %10 : vector<256xf32> to vector<1x256xf32>
    %cst_6 = arith.constant 1.600000e+01 : f32
    %12 = vector.broadcast %cst_6 : f32 to vector<1x256xf32>
    %13 = arith.divf %11, %12 : vector<1x256xf32>
    %cst_7 = arith.constant 9.99999974E-6 : f32
    %14 = vector.broadcast %cst_7 : f32 to vector<1x256xf32>
    %15 = arith.addf %13, %14 : vector<1x256xf32>
    %16 = math.rsqrt %15 : vector<1x256xf32>
    %17 = vector.broadcast %16 : vector<1x256xf32> to vector<16x256xf32>
    %18 = arith.mulf %8, %17 : vector<16x256xf32>
    %19 = vector.extract_strided_slice %2 {offsets = [0, 0], sizes = [16, 1], strides = [1, 1]} : vector<16x4xf32> to vector<16x1xf32>
    %20 = vector.broadcast %19 : vector<16x1xf32> to vector<16x256xf32>
    %21 = arith.mulf %18, %20 : vector<16x256xf32>
    %22 = vector.extract_strided_slice %2 {offsets = [0, 1], sizes = [16, 1], strides = [1, 1]} : vector<16x4xf32> to vector<16x1xf32>
    %23 = vector.broadcast %22 : vector<16x1xf32> to vector<16x256xf32>
    %24 = arith.addf %21, %23 : vector<16x256xf32>
    %25 = vector.extract_strided_slice %2 {offsets = [0, 2], sizes = [16, 1], strides = [1, 1]} : vector<16x4xf32> to vector<16x1xf32>
    %26 = vector.broadcast %25 : vector<16x1xf32> to vector<16x256xf32>
    %27 = arith.mulf %24, %26 : vector<16x256xf32>
    %28 = vector.extract_strided_slice %2 {offsets = [0, 3], sizes = [16, 1], strides = [1, 1]} : vector<16x4xf32> to vector<16x1xf32>
    %29 = vector.broadcast %28 : vector<16x1xf32> to vector<16x256xf32>
    %30 = arith.addf %27, %29 : vector<16x256xf32>
    %c0_8 = arith.constant 0 : index
    %c0_9 = arith.constant 0 : index
    %31 = vector.load %arg3[%c0_8, %c0_9] : memref<16x9xf32, #tpu.memory_space<vmem>>, vector<16x9xf32>
    %c0_10 = arith.constant 0 : index
    %c0_11 = arith.constant 0 : index
    %32 = vector.load %arg4[%c0_10, %c0_11] : memref<9x256xf32, #tpu.memory_space<vmem>>, vector<9x256xf32>
    %33 = vector.extract_strided_slice %31 {offsets = [0, 4], sizes = [16, 1], strides = [1, 1]} : vector<16x9xf32> to vector<16x1xf32>
    %34 = vector.broadcast %33 : vector<16x1xf32> to vector<16x256xf32>
    %35 = arith.mulf %30, %34 : vector<16x256xf32>
    %c17_i32 = arith.constant 17 : i32
    %36 = tpu.dynamic_rotate %30 by %c17_i32 dim 1 : vector<16x256xf32>, i32 -> vector<16x256xf32>
    %37 = vector.extract_strided_slice %32 {offsets = [0, 0], sizes = [1, 256], strides = [1, 1]} : vector<9x256xf32> to vector<1x256xf32>
    %38 = vector.broadcast %37 : vector<1x256xf32> to vector<16x256xf32>
    %39 = arith.mulf %36, %38 : vector<16x256xf32>
    %40 = vector.extract_strided_slice %31 {offsets = [0, 0], sizes = [16, 1], strides = [1, 1]} : vector<16x9xf32> to vector<16x1xf32>
    %41 = vector.broadcast %40 : vector<16x1xf32> to vector<16x256xf32>
    %42 = arith.mulf %39, %41 : vector<16x256xf32>
    %43 = arith.addf %35, %42 : vector<16x256xf32>
    %c16_i32 = arith.constant 16 : i32
    %44 = tpu.dynamic_rotate %30 by %c16_i32 dim 1 : vector<16x256xf32>, i32 -> vector<16x256xf32>
    %45 = vector.extract_strided_slice %32 {offsets = [1, 0], sizes = [1, 256], strides = [1, 1]} : vector<9x256xf32> to vector<1x256xf32>
    %46 = vector.broadcast %45 : vector<1x256xf32> to vector<16x256xf32>
    %47 = arith.mulf %44, %46 : vector<16x256xf32>
    %48 = vector.extract_strided_slice %31 {offsets = [0, 1], sizes = [16, 1], strides = [1, 1]} : vector<16x9xf32> to vector<16x1xf32>
    %49 = vector.broadcast %48 : vector<16x1xf32> to vector<16x256xf32>
    %50 = arith.mulf %47, %49 : vector<16x256xf32>
    %51 = arith.addf %43, %50 : vector<16x256xf32>
    %c15_i32 = arith.constant 15 : i32
    %52 = tpu.dynamic_rotate %30 by %c15_i32 dim 1 : vector<16x256xf32>, i32 -> vector<16x256xf32>
    %53 = vector.extract_strided_slice %32 {offsets = [2, 0], sizes = [1, 256], strides = [1, 1]} : vector<9x256xf32> to vector<1x256xf32>
    %54 = vector.broadcast %53 : vector<1x256xf32> to vector<16x256xf32>
    %55 = arith.mulf %52, %54 : vector<16x256xf32>
    %56 = vector.extract_strided_slice %31 {offsets = [0, 2], sizes = [16, 1], strides = [1, 1]} : vector<16x9xf32> to vector<16x1xf32>
    %57 = vector.broadcast %56 : vector<16x1xf32> to vector<16x256xf32>
    %58 = arith.mulf %55, %57 : vector<16x256xf32>
    %59 = arith.addf %51, %58 : vector<16x256xf32>
    %c1_i32 = arith.constant 1 : i32
    %60 = tpu.dynamic_rotate %30 by %c1_i32 dim 1 : vector<16x256xf32>, i32 -> vector<16x256xf32>
    %61 = vector.extract_strided_slice %32 {offsets = [3, 0], sizes = [1, 256], strides = [1, 1]} : vector<9x256xf32> to vector<1x256xf32>
    %62 = vector.broadcast %61 : vector<1x256xf32> to vector<16x256xf32>
    %63 = arith.mulf %60, %62 : vector<16x256xf32>
    %64 = vector.extract_strided_slice %31 {offsets = [0, 3], sizes = [16, 1], strides = [1, 1]} : vector<16x9xf32> to vector<16x1xf32>
    %65 = vector.broadcast %64 : vector<16x1xf32> to vector<16x256xf32>
    %66 = arith.mulf %63, %65 : vector<16x256xf32>
    %67 = arith.addf %59, %66 : vector<16x256xf32>
    %c255_i32 = arith.constant 255 : i32
    %68 = tpu.dynamic_rotate %30 by %c255_i32 dim 1 : vector<16x256xf32>, i32 -> vector<16x256xf32>
    %69 = vector.extract_strided_slice %32 {offsets = [5, 0], sizes = [1, 256], strides = [1, 1]} : vector<9x256xf32> to vector<1x256xf32>
    %70 = vector.broadcast %69 : vector<1x256xf32> to vector<16x256xf32>
    %71 = arith.mulf %68, %70 : vector<16x256xf32>
    %72 = vector.extract_strided_slice %31 {offsets = [0, 5], sizes = [16, 1], strides = [1, 1]} : vector<16x9xf32> to vector<16x1xf32>
    %73 = vector.broadcast %72 : vector<16x1xf32> to vector<16x256xf32>
    %74 = arith.mulf %71, %73 : vector<16x256xf32>
    %75 = arith.addf %67, %74 : vector<16x256xf32>
    %c241_i32 = arith.constant 241 : i32
    %76 = tpu.dynamic_rotate %30 by %c241_i32 dim 1 : vector<16x256xf32>, i32 -> vector<16x256xf32>
    %77 = vector.extract_strided_slice %32 {offsets = [6, 0], sizes = [1, 256], strides = [1, 1]} : vector<9x256xf32> to vector<1x256xf32>
    %78 = vector.broadcast %77 : vector<1x256xf32> to vector<16x256xf32>
    %79 = arith.mulf %76, %78 : vector<16x256xf32>
    %80 = vector.extract_strided_slice %31 {offsets = [0, 6], sizes = [16, 1], strides = [1, 1]} : vector<16x9xf32> to vector<16x1xf32>
    %81 = vector.broadcast %80 : vector<16x1xf32> to vector<16x256xf32>
    %82 = arith.mulf %79, %81 : vector<16x256xf32>
    %83 = arith.addf %75, %82 : vector<16x256xf32>
    %c240_i32 = arith.constant 240 : i32
    %84 = tpu.dynamic_rotate %30 by %c240_i32 dim 1 : vector<16x256xf32>, i32 -> vector<16x256xf32>
    %85 = vector.extract_strided_slice %32 {offsets = [7, 0], sizes = [1, 256], strides = [1, 1]} : vector<9x256xf32> to vector<1x256xf32>
    %86 = vector.broadcast %85 : vector<1x256xf32> to vector<16x256xf32>
    %87 = arith.mulf %84, %86 : vector<16x256xf32>
    %88 = vector.extract_strided_slice %31 {offsets = [0, 7], sizes = [16, 1], strides = [1, 1]} : vector<16x9xf32> to vector<16x1xf32>
    %89 = vector.broadcast %88 : vector<16x1xf32> to vector<16x256xf32>
    %90 = arith.mulf %87, %89 : vector<16x256xf32>
    %91 = arith.addf %83, %90 : vector<16x256xf32>
    %c239_i32 = arith.constant 239 : i32
    %92 = tpu.dynamic_rotate %30 by %c239_i32 dim 1 : vector<16x256xf32>, i32 -> vector<16x256xf32>
    %93 = vector.extract_strided_slice %32 {offsets = [8, 0], sizes = [1, 256], strides = [1, 1]} : vector<9x256xf32> to vector<1x256xf32>
    %94 = vector.broadcast %93 : vector<1x256xf32> to vector<16x256xf32>
    %95 = arith.mulf %92, %94 : vector<16x256xf32>
    %96 = vector.extract_strided_slice %31 {offsets = [0, 8], sizes = [16, 1], strides = [1, 1]} : vector<16x9xf32> to vector<16x1xf32>
    %97 = vector.broadcast %96 : vector<16x1xf32> to vector<16x256xf32>
    %98 = arith.mulf %95, %97 : vector<16x256xf32>
    %99 = arith.addf %91, %98 : vector<16x256xf32>
    %c0_12 = arith.constant 0 : index
    %c0_13 = arith.constant 0 : index
    %100 = vector.load %arg5[%c0_12, %c0_13] : memref<16x16xf32, #tpu.memory_space<vmem>>, vector<16x16xf32>
    %cst_14 = arith.constant dense<0.000000e+00> : vector<16x256xf32>
    %101 = tpu.matmul %100, %99, %cst_14 {dimension_numbers = #tpu.dot_dimension_numbers<[1], [0], [0], [1], [0, 0, 1, 1], [], []>} : vector<16x16xf32>, vector<16x256xf32>, vector<16x256xf32> -> vector<16x256xf32>
    %cst_15 = arith.constant dense<0.000000e+00> : vector<16xf32>
    %102 = vector.multi_reduction <add>, %30, %cst_15 [1] : vector<16x256xf32> to vector<16xf32>
    %103 = vector.shape_cast %102 : vector<16xf32> to vector<16x1xf32>
    %cst_16 = arith.constant 2.560000e+02 : f32
    %104 = vector.broadcast %cst_16 : f32 to vector<16x1xf32>
    %105 = arith.divf %103, %104 : vector<16x1xf32>
    %c0_17 = arith.constant 0 : index
    %c0_18 = arith.constant 0 : index
    %106 = vector.load %arg6[%c0_17, %c0_18] : memref<1x3xf32, #tpu.memory_space<vmem>>, vector<1x3xf32>
    %cst_19 = arith.constant 0.000000e+00 : f32
    %107 = vector.broadcast %cst_19 : f32 to vector<16x1xf32>
    %cst_20 = arith.constant 0.000000e+00 : f32
    %108 = vector.broadcast %cst_20 : f32 to vector<1x1xf32>
    %109 = vector.extract_strided_slice %105 {offsets = [0, 0], sizes = [15, 1], strides = [1, 1]} : vector<16x1xf32> to vector<15x1xf32>
    %110 = tpu.concatenate %108, %109 in 0 : vector<1x1xf32>, vector<15x1xf32> -> vector<16x1xf32>
    %111 = vector.extract_strided_slice %106 {offsets = [0, 0], sizes = [1, 1], strides = [1, 1]} : vector<1x3xf32> to vector<1x1xf32>
    %112 = vector.broadcast %111 : vector<1x1xf32> to vector<16x1xf32>
    %113 = arith.mulf %110, %112 : vector<16x1xf32>
    %114 = arith.addf %107, %113 : vector<16x1xf32>
    %115 = vector.extract_strided_slice %106 {offsets = [0, 1], sizes = [1, 1], strides = [1, 1]} : vector<1x3xf32> to vector<1x1xf32>
    %116 = vector.broadcast %115 : vector<1x1xf32> to vector<16x1xf32>
    %117 = arith.mulf %105, %116 : vector<16x1xf32>
    %118 = arith.addf %114, %117 : vector<16x1xf32>
    %119 = vector.extract_strided_slice %105 {offsets = [1, 0], sizes = [15, 1], strides = [1, 1]} : vector<16x1xf32> to vector<15x1xf32>
    %cst_21 = arith.constant 0.000000e+00 : f32
    %120 = vector.broadcast %cst_21 : f32 to vector<1x1xf32>
    %121 = tpu.concatenate %119, %120 in 0 : vector<15x1xf32>, vector<1x1xf32> -> vector<16x1xf32>
    %122 = vector.extract_strided_slice %106 {offsets = [0, 2], sizes = [1, 1], strides = [1, 1]} : vector<1x3xf32> to vector<1x1xf32>
    %123 = vector.broadcast %122 : vector<1x1xf32> to vector<16x1xf32>
    %124 = arith.mulf %121, %123 : vector<16x1xf32>
    %125 = arith.addf %118, %124 : vector<16x1xf32>
    %126 = arith.negf %125 : vector<16x1xf32>
    %127 = math.exp %126 : vector<16x1xf32>
    %cst_22 = arith.constant 1.000000e+00 : f32
    %128 = vector.broadcast %cst_22 : f32 to vector<16x1xf32>
    %129 = arith.addf %128, %127 : vector<16x1xf32>
    %130 = arith.divf %128, %129 : vector<16x1xf32>
    %131 = vector.broadcast %130 : vector<16x1xf32> to vector<16x256xf32>
    %132 = arith.mulf %30, %131 : vector<16x256xf32>
    %133 = arith.addf %101, %132 : vector<16x256xf32>
    %cst_23 = arith.constant 0.000000e+00 : f32
    %134 = vector.broadcast %cst_23 : f32 to vector<16x256xf32>
    %135 = arith.cmpf oge, %133, %134 : vector<16x256xf32>
    %cst_24 = arith.constant 2.000000e-01 : f32
    %136 = vector.broadcast %cst_24 : f32 to vector<16x256xf32>
    %137 = arith.mulf %136, %133 : vector<16x256xf32>
    %138 = arith.select %135, %133, %137 : vector<16x256xi1>, vector<16x256xf32>
    %c0_25 = arith.constant 0 : index
    %c0_26 = arith.constant 0 : index
    %139 = vector.load %arg7[%c0_25, %c0_26] : memref<16x2xf32, #tpu.memory_space<vmem>>, vector<16x2xf32>
    %c0_27 = arith.constant 0 : index
    %c0_28 = arith.constant 0 : index
    %140 = vector.load %arg8[%c0_27, %c0_28] : memref<3x2xf32, #tpu.memory_space<vmem>>, vector<3x2xf32>
    %cst_29 = arith.constant 0.000000e+00 : f32
    %141 = vector.broadcast %cst_29 : f32 to vector<3x256xf32>
    %142 = vector.extract_strided_slice %139 {offsets = [0, 0], sizes = [16, 1], strides = [1, 1]} : vector<16x2xf32> to vector<16x1xf32>
    %143 = vector.broadcast %142 : vector<16x1xf32> to vector<16x256xf32>
    %144 = arith.mulf %143, %138 : vector<16x256xf32>
    %cst_30 = arith.constant dense<0.000000e+00> : vector<256xf32>
    %145 = vector.multi_reduction <add>, %144, %cst_30 [0] : vector<16x256xf32> to vector<256xf32>
    %146 = vector.shape_cast %145 : vector<256xf32> to vector<1x256xf32>
    %cst_31 = arith.constant 0.000000e+00 : f32
    %147 = vector.broadcast %cst_31 : f32 to vector<1x256xf32>
    %148 = arith.maximumf %146, %147 : vector<1x256xf32>
    %149 = vector.extract_strided_slice %140 {offsets = [0, 0], sizes = [3, 1], strides = [1, 1]} : vector<3x2xf32> to vector<3x1xf32>
    %150 = vector.broadcast %149 : vector<3x1xf32> to vector<3x256xf32>
    %151 = vector.broadcast %148 : vector<1x256xf32> to vector<3x256xf32>
    %152 = arith.mulf %150, %151 : vector<3x256xf32>
    %153 = arith.addf %141, %152 : vector<3x256xf32>
    %154 = vector.extract_strided_slice %139 {offsets = [0, 1], sizes = [16, 1], strides = [1, 1]} : vector<16x2xf32> to vector<16x1xf32>
    %155 = vector.broadcast %154 : vector<16x1xf32> to vector<16x256xf32>
    %156 = arith.mulf %155, %138 : vector<16x256xf32>
    %cst_32 = arith.constant dense<0.000000e+00> : vector<256xf32>
    %157 = vector.multi_reduction <add>, %156, %cst_32 [0] : vector<16x256xf32> to vector<256xf32>
    %158 = vector.shape_cast %157 : vector<256xf32> to vector<1x256xf32>
    %cst_33 = arith.constant 0.000000e+00 : f32
    %159 = vector.broadcast %cst_33 : f32 to vector<1x256xf32>
    %160 = arith.maximumf %158, %159 : vector<1x256xf32>
    %161 = vector.extract_strided_slice %140 {offsets = [0, 1], sizes = [3, 1], strides = [1, 1]} : vector<3x2xf32> to vector<3x1xf32>
    %162 = vector.broadcast %161 : vector<3x1xf32> to vector<3x256xf32>
    %163 = vector.broadcast %160 : vector<1x256xf32> to vector<3x256xf32>
    %164 = arith.mulf %162, %163 : vector<3x256xf32>
    %165 = arith.addf %153, %164 : vector<3x256xf32>
    %166 = arith.negf %165 : vector<3x256xf32>
    %167 = math.exp %166 : vector<3x256xf32>
    %cst_34 = arith.constant 1.000000e+00 : f32
    %168 = vector.broadcast %cst_34 : f32 to vector<3x256xf32>
    %169 = arith.addf %168, %167 : vector<3x256xf32>
    %170 = arith.divf %168, %169 : vector<3x256xf32>
    %cst_35 = arith.constant 2.000000e+00 : f32
    %171 = vector.broadcast %cst_35 : f32 to vector<3x256xf32>
    %172 = arith.mulf %170, %171 : vector<3x256xf32>
    %173 = arith.addf %138, %1 : vector<16x256xf32>
    %c0_36 = arith.constant 0 : index
    %c0_37 = arith.constant 0 : index
    %c0_38 = arith.constant 0 : index
    %174 = vector.load %arg9[%c0_36, %c0_37, %c0_38] : memref<1x16x256xf32, #tpu.memory_space<vmem>>, vector<1x16x256xf32>
    %175 = vector.shape_cast %174 : vector<1x16x256xf32> to vector<16x256xf32>
    %176 = vector.shape_cast %173 : vector<16x256xf32> to vector<1x16x256xf32>
    tpu.vector_store %arg9[%c0_36, %c0_37, %c0_38], %176 {strides = array<i32>} : memref<1x16x256xf32, #tpu.memory_space<vmem>>, vector<1x16x256xf32>,
    %c0_39 = arith.constant 0 : index
    %c0_40 = arith.constant 0 : index
    %c0_41 = arith.constant 0 : index
    %177 = vector.load %arg10[%c0_39, %c0_40, %c0_41] : memref<1x3x256xf32, #tpu.memory_space<vmem>>, vector<1x3x256xf32>
    %178 = vector.shape_cast %177 : vector<1x3x256xf32> to vector<3x256xf32>
    %179 = vector.shape_cast %172 : vector<3x256xf32> to vector<1x3x256xf32>
    tpu.vector_store %arg10[%c0_39, %c0_40, %c0_41], %179 {strides = array<i32>} : memref<1x3x256xf32, #tpu.memory_space<vmem>>, vector<1x3x256xf32>,
    return
  }
  func.func @transform_0(%arg0: i32) -> (i32, i32, i32) {
    %c0_i32 = arith.constant 0 : i32
    %c0_i32_0 = arith.constant 0 : i32
    %c0_i32_1 = arith.constant 0 : i32
    return %arg0, %c0_i32, %c0_i32_0 : i32, i32, i32
  }
  func.func @transform_1(%arg0: i32) -> (i32, i32) {
    %c0_i32 = arith.constant 0 : i32
    %c0_i32_0 = arith.constant 0 : i32
    %c0_i32_1 = arith.constant 0 : i32
    return %c0_i32, %c0_i32_0 : i32, i32
  }
  func.func @transform_2(%arg0: i32) -> (i32, i32) {
    %c0_i32 = arith.constant 0 : i32
    %c0_i32_0 = arith.constant 0 : i32
    %c0_i32_1 = arith.constant 0 : i32
    return %c0_i32, %c0_i32_0 : i32, i32
  }
  func.func @transform_3(%arg0: i32) -> (i32, i32) {
    %c0_i32 = arith.constant 0 : i32
    %c0_i32_0 = arith.constant 0 : i32
    %c0_i32_1 = arith.constant 0 : i32
    return %c0_i32, %c0_i32_0 : i32, i32
  }
  func.func @transform_4(%arg0: i32) -> (i32, i32) {
    %c0_i32 = arith.constant 0 : i32
    %c0_i32_0 = arith.constant 0 : i32
    %c0_i32_1 = arith.constant 0 : i32
    return %c0_i32, %c0_i32_0 : i32, i32
  }
  func.func @transform_5(%arg0: i32) -> (i32, i32) {
    %c0_i32 = arith.constant 0 : i32
    %c0_i32_0 = arith.constant 0 : i32
    %c0_i32_1 = arith.constant 0 : i32
    return %c0_i32, %c0_i32_0 : i32, i32
  }
  func.func @transform_6(%arg0: i32) -> (i32, i32) {
    %c0_i32 = arith.constant 0 : i32
    %c0_i32_0 = arith.constant 0 : i32
    %c0_i32_1 = arith.constant 0 : i32
    return %c0_i32, %c0_i32_0 : i32, i32
  }
  func.func @transform_7(%arg0: i32) -> (i32, i32) {
    %c0_i32 = arith.constant 0 : i32
    %c0_i32_0 = arith.constant 0 : i32
    %c0_i32_1 = arith.constant 0 : i32
    return %c0_i32, %c0_i32_0 : i32, i32
  }
  func.func @transform_8(%arg0: i32) -> (i32, i32, i32) {
    %c0_i32 = arith.constant 0 : i32
    %c0_i32_0 = arith.constant 0 : i32
    %c0_i32_1 = arith.constant 0 : i32
    return %arg0, %c0_i32, %c0_i32_0 : i32, i32, i32
  }
  func.func @transform_9(%arg0: i32) -> (i32, i32, i32) {
    %c0_i32 = arith.constant 0 : i32
    %c0_i32_0 = arith.constant 0 : i32
    %c0_i32_1 = arith.constant 0 : i32
    return %arg0, %c0_i32, %c0_i32_0 : i32, i32, i32
  }
}

</mosaic_0001>

<bundles_post_ra>
// kernel: tpu_custom_call.1
= control target key start
LH: loop header
LB: loop body
LE: loop exit
PB: predicated region body
PF: predicated region fallthrough
CT: control target
= control target key end

     0   :  { %s2194_s0 = inlined_call_operand.hbm [shape: f32[2,16,256], index: 0, kind: input, shape index: {}]   ;;  %s2195_s1 = inlined_call_operand.vmem [shape: f32[16,4], index: 1, kind: input, shape index: {}]   ;;  %s2196_s2 = inlined_call_operand.hbm [shape: f32[16,9], index: 2, kind: input, shape index: {}]   ;;  %s2197_s3 = inlined_call_operand.vmem [shape: f32[9,256], index: 3, kind: input, shape index: {}]   ;;  %s2198_s4 = inlined_call_operand.hbm [shape: f32[16,16], index: 4, kind: input, shape index: {}]   ;;  %s2199_s5 = inlined_call_operand.vmem [shape: f32[1,3], index: 5, kind: input, shape index: {}]   ;;  %s2200_s6 = inlined_call_operand.vmem [shape: f32[16,2], index: 6, kind: input, shape index: {}]   ;;  %s2201_s7 = inlined_call_operand.vmem [shape: f32[3,2], index: 7, kind: input, shape index: {}]   ;;  %s2202_s8 = inlined_call_operand.hbm [shape: f32[2,16,256], index: 8, kind: output, shape index: {0}]   ;;  %s2203_s9 = inlined_call_operand.vmem [shape: f32[2,3,256], index: 9, kind: output, shape index: {1}]  }
   0x1   :  { %2204 = sst [smem:[#allocation13_spill]] %s2196_s2 }
   0x2   :  { %2205 = sst [smem:[#allocation14_spill]] %s2198_s4 }
   0x3   :  { %15 = vsyncpa [#allocation3], 0 }
   0x4   :  { %17 = vsyncpa [#allocation3 + $0x1], 0 }
   0x5   :  { %18 = vsyncpa [#allocation6], 0 }
   0x6   :  { %19 = vsyncpa [#allocation4], 0 }
   0x7   :  { %21 = vsyncpa [#allocation4 + $0x1], 0  ;;  %s1702_s30 = smov 0   ;;  %s1704_s10 = smov 0  }
   0x8   :  { %s1706_s11 = smov 0   ;;  %s1708_s12 = smov 0  }
   0x9 LB: > { %s1723_s13 = sadd.s32 4294967295, %s1623_s12   ;;  %s1281_s14 = sadd.s32 4294967294, %s1623_s12   ;;  %s1623_s12 = sphi %s1708_s12, %s2219_s12   ;;  %s1619_s11 = sphi %s1706_s11, %s2218_s11   ;;  %s1615_s10 = sphi %s1704_s10, %s2217_s10   ;;  %s1611_s30 = sphi %s1702_s30, %s2216_s30  }
   0xa   : > { %p47_p0 = scmp.ne.s32.totalorder %s1615_s10, %s1611_s30  ;;  %p48_p1 = scmp.eq.s32.totalorder %s1723_s13, 0 }
   0xb   : > { %p218_p2 = scmp.eq.s32.totalorder %s1723_s13, 1  ;;  %p224_p3 = scmp.eq.s32.totalorder %s1281_s14, 1 }
   0xc   : > { %p1732_p4 = por %p48_p1, %p47_p0  ;;  %p1282_p5 = scmp.ge.s32.totalorder %s1623_s12, 1 }
   0xd   : > { %p1737_p6 = por %p224_p3, %p47_p0  ;;  %p257_p7 = scmp.lt.s32.totalorder %s1623_s12, 3 }
   0xe   : > { %s2208_s2 = sld [smem:[#allocation13_spill]]  ;;  %s1625_s21 = smov [#allocation5]  }
   0xf   : > { %p1745_p8 = pnand %p1282_p5, %p257_p7  ;;  %s273_s22 = sshll.u32 %s1625_s21, 4  ;;  %s274_s22 = int_to_ptr.vmem [resolvable:$true] %s273_s22 }
  0x10   : > { %s2210_s4 = sld [smem:[#allocation14_spill]]  ;;  %s1626_s26 = smov 128  }
  0x11   : > { %p1328_p9 = pneg %p1745_p8  ;;  %s1627_s27 = smov 8  }
  0x12   : > { %s1628_s28 = smov [#allocation7]   ;;  %s1758_s14 = sadd.s32 1, %s1623_s12  }
  0x13   : > { %p1329_p10 = pnand %p1328_p9, %p48_p1  ;;  %s290_s29 = sshll.u32 %s1628_s28, 4  ;;  %s291_s29 = int_to_ptr.vmem [resolvable:$true] %s290_s29 }
  0x14   : > { %s271_s19 = sshll.u32 %s2208_s2, 4  ;;  %s34_s17 = sadd.s32 1, %s1619_s11  ;;  %s272_s19 = int_to_ptr.hbm [resolvable:$true] %s271_s19 }
  0x15   : > { %1331 = dma.hbm_to_vmem [thread:$0]  (!%p1329_p10), %s272_s19, 256, %s274_s22, [#allocation6], %s1626_s26, %s1626_s26, %s1627_s27  }
  0x16   : > { %s288_s25 = sshll.u32 %s2210_s4, 4  ;;  %s31_s18 = ssub.s32 %s1623_s12, %s1758_s14  ;;  %s289_s25 = int_to_ptr.hbm [resolvable:$true] %s288_s25 }
  0x17   : > { %1334 = dma.hbm_to_vmem [thread:$0]  (!%p1329_p10), %s289_s25, 256, %s291_s29, [#allocation6], %s1626_s26, %s1626_s26, %s1627_s27  }
  0x18   : > { %p41_p12 = scmp.ne.s32.totalorder %s1619_s11, %s1615_s10  ;;  %p32_p13 = scmp.eq.s32.totalorder %s31_s18, 0 }
  0x19   : > { %p42_p0 = scmp.eq.s32.totalorder %s1623_s12, 0  ;;  %p1345_p5 = scmp.lt.s32.totalorder %s1623_s12, 2 }
  0x1a   : > { %p1768_p3 = por %p218_p2, %p41_p12  ;;  %s313_s22 = sand.u32 1, %s1619_s11  }
  0x1b   : > { %s1774_s19 = scalar_select %p32_p13, %s1619_s11, %s34_s17  }
  0x1c   : > { %p43_p7 = por %p42_p0, %p41_p12  ;;  %s1286_s23 = sshll.u32 %s313_s22, 5 }
  0x1d   : > { %2212 = sst [smem:[#allocation12_spill]] %s1774_s19  ;;  %s1309_s24 = sshll.u32 %s1623_s12, 5 }
  0x1e   : > { %s322_s27 = scalar_lea.hbm %s2194_s0, %s1309_s24  ;;  %s317_s28 = scalar_lea.vmem [#allocation2], %s1286_s23 }
  0x1f   : > { %s325_s29 = sshll.u32 %s317_s28, 4  ;;  %s323_s18 = sshll.u32 %s322_s27, 4  ;;  %s326_s29 = int_to_ptr.vmem [resolvable:$true] %s325_s29  ;;  %s324_s18 = int_to_ptr.hbm [resolvable:$true] %s323_s18 }
  0x20   : > { %p1781_p2 = pnand %p1345_p5, %p43_p7  ;;  %s314_s17 = scalar_lea.sflag [#allocation3], %s313_s22 }
  0x21   : > { %s1523_s4 = sshra.s32 %s324_s18, 4  ;;  %s1530_s25 = scalar_lea.hbm %s2194_s0, 64  ;;  %s1524_s4 = int_to_ptr.hbm [resolvable:$true] %s1523_s4 }
  0x22   : > { %s1525_s19 = scalar_lea.hbm %s1524_s4, 32  ;;  %p1527_p10 = pneg %p1781_p2 }
  0x23   : > { %p1526_p9 = scmp.ne.s32.totalorder %s1524_s4, %s1525_s19  ;;  %p1531_p0 = scmp.lt.s32.totalorder %s1524_s4, %s2194_s0 }
  0x24   : > { %p1532_p5 = scmp.lt.s32.totalorder %s1530_s25, %s1525_s19 }
  0x25   : > { %p1528_p12 = pnand %p1527_p10, %p1526_p9 }
  0x26   : > { %p1533_p7 = por %p1532_p5, %p1531_p0 }
  0x27   : > { %p1529_p13 = pneg %p1528_p12 }
  0x29   : > { %p1534_p11 = pnand %p1533_p7, %p1529_p13 }
  0x2b   : > { %1537 = shalt.err (!%p1534_p11)
}
  0x2c   : > { %s1629_s22 = smov 256   ;;  %s1630_s28 = smov 16  }
  0x2d   : > { %1338 = dma.hbm_to_vmem [thread:$0]  (!%p1781_p2), %s324_s18, 512, %s326_s29, %s314_s17, %s1629_s22, %s1629_s22, %s1630_s28  }
  0x2e   : > { %337 = sbr.rel (%p1745_p8) target bundleno = 808 (0x328), region = 52  ;;  %s1798_s24 = sand.u32 (!%p1745_p8), 1, %s1615_s10  }
  0x2f   : > { %s1290_s4 = sshll.u32 (!%p1745_p8), %s1798_s24, 5  ;;  %s340_s19 = scalar_lea.sflag (!%p1745_p8), [#allocation3], %s1798_s24 }
  0x30   : > { %s1804_s23 = scalar_lea.vmem (!%p1745_p8), [#allocation2], %s1290_s4 }
  0x33   : > { %1598 = dma.done.wait (%p1732_p4), %s340_s19, 512  }
  0x34   : > { %1600 = vsyncadd (%p1732_p4), %s340_s19, 4294966784 }
  0x35   : > { %1602 = dma.done.wait (%p48_p1), [#allocation6], 512  }
  0x36   : > { %1604 = vsyncadd (%p48_p1), [#allocation6], 4294966784  ;;  %v1631_v0 = vmov 3   ;;  %v1632_v1 = vmov 1   ;;  %v1633_v2 = vmov 2   ;;  %v404_v3 = vld [vmem:[%s2195_s1 + $0x8] sm:$0xff] }
  0x37   : > { %1410 = vset.pattern.permute.xlu0 %v1631_v0  ;;  %1408 = vset.pattern.permute.xlu1 %v1632_v1  ;;  %v403_v4 = vld [vmem:[%s2195_s1] sm:$0xff]  ;;  %v1634_v5 = vmov 0   ;;  %v1635_v7 = vmov 4   ;;  %v1827_v8 = vld [vmem:[#allocation5 + $0x8] sm:$0xff]  ;;  %v1636_v9 = vmov 16.0   ;;  %v1835_v12 = vld [vmem:[%s1804_s23 + $0x10] sm:$0xff] }
  0x38   : > { %1409 = vset.pattern.permute.xlu2 %v1633_v2  ;;  %521 = vperm.xlu0 %1410, %v404_v3   ;;  %v1824_v6 = vld [vmem:[#allocation5] sm:$0xff]  ;;  %1437 = vrcp.f32 %v1636_v9  ;;  %v400_v11 = vld [vmem:[%s1804_s23 + $0x8] sm:$0xff]  ;;  %v1840_v13 = vld [vmem:[%s1804_s23 + $0x18] sm:$0xff]  ;;  %v1637_v60 = vmov 5   ;;  %s1639_s18 = smov 17   ;;  %s1640_s17 = smov 16  }
  0x39   : > { %493 = vperm.xlu1 %1408, %v403_v4   ;;  %505 = vperm.xlu2 %1409, %v403_v4   ;;  %v399_v10 = vld [vmem:[%s1804_s23] sm:$0xff]  ;;  %v412_v15 = vadd.f32 %v1840_v13, %v400_v11  ;;  %s1641_s25 = smov 15   ;;  %s1642_s26 = smov 1  }
  0x3a   : > { %v405_v14 = vadd.f32 %v1835_v12, %v399_v10  ;;  %s1643_s27 = smov 113   ;;  %s1644_s22 = smov 127  }
  0x3b   : > { %v413_v17 = vrot.slane %v412_v15, 4  ;;  %s1646_s28 = smov 112   ;;  %s1647_s19 = smov 111  }
  0x3c   : > { %v406_v16 = vrot.slane %v405_v14, 4  ;;  %s1650_s2 = smov 126  }
  0x3d   : > { %v414_v21 = vadd.f32 %v413_v17, %v412_v15 }
  0x3e   : > { %v1438_v18 = vpop.eup %1437  ;;  %v407_v19 = vadd.f32 %v406_v16, %v405_v14 }
  0x3f   : > { %v420_v20 = vmul.f32 16.0, %v1438_v18  ;;  %v415_v24 = vrot.slane %v414_v21, 2  ;;  %vm424_vm0 = vweird.f32 %v1438_v18 }
  0x40   : > { %1411 = vset.pattern.permute.xlu0 %v1634_v5  ;;  %v408_v22 = vrot.slane %v407_v19, 2 }
  0x41   : > { %497 = vperm.xlu1 %1408, %v404_v3   ;;  %480 = vperm.xlu0 %1411, %v403_v4   ;;  %v421_v23 = vsub.f32 1.0, %v420_v20  ;;  %v416_v27 = vadd.f32 %v415_v24, %v414_v21 }
  0x42   : > { %509 = vperm.xlu2 %1409, %v404_v3   ;;  %v409_v25 = vadd.f32 %v408_v22, %v407_v19 }
  0x43   : > { %v422_v26 = vmul.f32 %v1438_v18, %v421_v23  ;;  %v417_v30 = vrot.slane %v416_v27, 1 }
  0x44   : > { %v410_v28 = vrot.slane %v409_v25, 1 }
  0x45   : > { %v423_v29 = vadd.f32 %v1438_v18, %v422_v26  ;;  %v418_v33 = vadd.f32 %v417_v30, %v416_v27 }
  0x46   : > { %v411_v31 = vadd.f32 %v410_v28, %v409_v25 }
  0x47   : > { %v425_v32 = vsel %vm424_vm0, %v1438_v18, %v423_v29  ;;  %vm850_vm0 = vcmask 1040384  }
  0x48   : > { %v426_v34 = vmul.f32 %v425_v32, %v411_v31  ;;  %v427_v35 = vmul.f32 %v425_v32, %v418_v33 }
  0x49   : > { %1412 = vset.pattern.permute.xlu1 %v1631_v0  ;;  %485 = vperm.xlu0 %1411, %v404_v3  }
  0x4a   : > { %517 = vperm.xlu1 %1412, %v403_v4   ;;  %1413 = vset.pattern.permute.xlu2 %v1635_v7  ;;  %v1847_v36 = vsub.f32 %v399_v10, %v426_v34  ;;  %v1850_v37 = vsub.f32 %v1835_v12, %v426_v34  ;;  %v429_v38 = vsub.f32 %v400_v11, %v427_v35 }
  0x4b   : > { %536 = vperm.xlu2 %1413, %v1824_v6   ;;  %v1853_v39 = vsub.f32 %v1840_v13, %v427_v35 }
  0x4c   : > { %v432_v40 = vmul.f32 %v1847_v36, %v1847_v36  ;;  %v434_v41 = vmul.f32 %v1850_v37, %v1850_v37  ;;  %v433_v42 = vmul.f32 %v429_v38, %v429_v38 }
  0x4d   : > { %v435_v43 = vmul.f32 %v1853_v39, %v1853_v39 }
  0x4e   : > { %v436_v44 = vadd.f32 %v434_v41, %v432_v40 }
  0x4f   : > { %v443_v45 = vadd.f32 %v435_v43, %v433_v42 }
  0x50   : > { %v437_v46 = vrot.slane %v436_v44, 4 }
  0x51   : > { %570 = vperm.xlu0 %1411, %v1824_v6   ;;  %v444_v47 = vrot.slane %v443_v45, 4 }
  0x52   : > { %1414 = vset.pattern.permute.xlu1 %v1635_v7  ;;  %v438_v48 = vadd.f32 %v437_v46, %v436_v44 }
  0x53   : > { %541 = vperm.xlu1 %1414, %v1827_v8   ;;  %v445_v49 = vadd.f32 %v444_v47, %v443_v45  ;;  %1420 = vset.pattern.permute.xlu2 %v1637_v60 }
  0x54   : > { %v439_v50 = vrot.slane %v438_v48, 2  ;;  %714 = vperm.xlu2 %1420, %v1827_v8  }
  0x55   : > { %v446_v51 = vrot.slane %v445_v49, 2 }
  0x56   : > { %v440_v52 = vadd.f32 %v439_v50, %v438_v48  ;;  %v1645_v48 = vmov 8  }
  0x57   : > { %v447_v53 = vadd.f32 %v446_v51, %v445_v49 }
  0x58   : > { %v441_v54 = vrot.slane %v440_v52, 1 }
  0x59   : > { %1416 = vset.pattern.permute.xlu0 %v1632_v1  ;;  %v448_v55 = vrot.slane %v447_v53, 1 }
  0x5a   : > { %609 = vperm.xlu0 %1416, %v1827_v8   ;;  %v442_v56 = vadd.f32 %v441_v54, %v440_v52  ;;  %v1648_v52 = vmov 7  }
  0x5b   : > { %1415 = vset.pattern.permute.xlu1 %v1634_v5  ;;  %v449_v57 = vadd.f32 %v448_v55, %v447_v53 }
  0x5c   : > { %574 = vperm.xlu1 %1415, %v1827_v8   ;;  %v450_v58 = vmul.f32 %v442_v56, %v425_v32 }
  0x5d   : > { %v451_v59 = vmul.f32 %v449_v57, %v425_v32 }
  0x5e   : > { %v452_v61 = vadd.f32 1e-05, %v450_v58 }
  0x5f   : > { %v453_v62 = vadd.f32 1e-05, %v451_v59 }
  0x60   : > { %1439 = vrsqrt.f32 %v452_v61  ;;  %vm460_vm1 = vweird.f32 %v452_v61 }
  0x61   : > { %1441 = vrsqrt.f32 %v453_v62  ;;  %vm470_vm3 = vweird.f32 %v453_v62 }
  0x62   : > { %605 = vperm.xlu0 %1416, %v1824_v6  }
  0x64   : > { %1417 = vset.pattern.permute.xlu1 %v1633_v2 }
  0x65   : > { %644 = vperm.xlu1 %1417, %v1827_v8  }
  0x66   : > { %v1440_v63 = vpop.eup %1439 }
  0x67   : > { %v455_v3 = vmul.f32 %v1440_v63, %v452_v61  ;;  %vm461_vm2 = vweird.f32 %v1440_v63 }
  0x68   : > { %vm462_vm5 = vmor %vm460_vm1, %vm461_vm2  ;;  %vm876_vm1 = vcmask 1046528   ;;  %vm942_vm2 = vcmask 130048  }
  0x69   : > { %v456_v7 = vmul.f32 %v1440_v63, %v455_v3 }
  0x6a   : > { %1418 = vset.pattern.permute.xlu0 %v1633_v2  ;;  %v1442_v2 = vpop.eup %1441 }
  0x6b   : > { %640 = vperm.xlu0 %1418, %v1824_v6   ;;  %v465_v4 = vmul.f32 %v1442_v2, %v453_v62  ;;  %v457_v10 = vmul.f32 0.5, %v456_v7  ;;  %vm471_vm4 = vweird.f32 %v1442_v2  ;;  %v1955_v7 = vld [vmem:[%s2197_s3 + $0x8] sm:$0xff] }
  0x6c   : > { %vm472_vm6 = vmor %vm470_vm3, %vm471_vm4 }
  0x6d   : > { %1419 = vset.pattern.permute.xlu1 %v1631_v0  ;;  %v1638_v0 = vmov 6   ;;  %v466_v9 = vmul.f32 %v1442_v2, %v465_v4  ;;  %v458_v14 = vsub.f32 1.5, %v457_v10  ;;  %v1950_v4 = vld [vmem:[%s2197_s3] sm:$0xff] }
  0x6e   : > { %679 = vperm.xlu1 %1419, %v1827_v8   ;;  %1422 = vset.pattern.permute.xlu2 %v1638_v0  ;;  %v563_v10 = vperm.slane %v1950_v4, 0 }
  0x6f   : > { %749 = vperm.xlu2 %1422, %v1827_v8   ;;  %v467_v11 = vmul.f32 0.5, %v466_v9  ;;  %v459_v16 = vmul.f32 %v1440_v63, %v458_v14 }
  0x71   : > { %v468_v15 = vsub.f32 1.5, %v467_v11  ;;  %v463_v20 = vsel %vm462_vm5, %v1440_v63, %v459_v16 }
  0x72   : > { %v474_v22 = vmul.f32 %v463_v20, %v1847_v36  ;;  %v476_v31 = vmul.f32 %v463_v20, %v1850_v37 }
  0x73   : > { %v469_v17 = vmul.f32 %v1442_v2, %v468_v15  ;;  %1425 = vset.pattern.permute.xlu0 %v1645_v48 }
  0x75   : > { %v473_v21 = vsel %vm472_vm6, %v1442_v2, %v469_v17 }
  0x76   : > { %675 = vperm.xlu1 %1419, %v1824_v6   ;;  %v475_v23 = vmul.f32 %v473_v21, %v429_v38  ;;  %v477_v32 = vmul.f32 %v473_v21, %v1853_v39 }
  0x77   : > { %1424 = vset.pattern.permute.xlu2 %v1648_v52 }
  0x7e   : > { %1421 = vset.pattern.permute.xlu1 %v1637_v60 }
  0x7f   : > { %710 = vperm.xlu1 %1421, %v1824_v6  }
  0x87   : > { %1423 = vset.pattern.permute.xlu1 %v1638_v0  ;;  %v556_v0 = vlaneseq }
  0x89   : > { %v1945_v3 = vand.u32 127, %v556_v0 }
  0x8b   : > { %vm558_vm7 = vcmp.lt.s32.totalorder %v1945_v3, 17  ;;  %vm593_vm8 = vcmp.lt.s32.totalorder %v1945_v3, 16  ;;  %vm628_vm9 = vcmp.lt.s32.totalorder %v1945_v3, 15  ;;  %vm663_vm10 = vcmp.lt.s32.totalorder %v1945_v3, 1 }
  0x8c   : > { %vm698_vm11 = vcmp.lt.s32.totalorder %v1945_v3, 127  ;;  %vm733_vm12 = vcmp.lt.s32.totalorder %v1945_v3, 113  ;;  %vm768_vm13 = vcmp.lt.s32.totalorder %v1945_v3, 112  ;;  %vm803_vm14 = vcmp.lt.s32.totalorder %v1945_v3, 111 }
  0x93   : > { %v506_v28 = vpop.permute.xlu2 %505 }
  0x9c   : > { %v510_v45 = vpop.permute.xlu2 %509 }
  0xa5   : > { %v537_v50 = vpop.permute.xlu2 %536 }
  0xaa   : > { %v522_v19 = vpop.permute.xlu0 %521 }
  0xab   : > { %v494_v18 = vpop.permute.xlu1 %493 }
  0xae   : > { %v1920_v53 = vpop.permute.xlu2 %714 }
  0xb3   : > { %v498_v24 = vpop.permute.xlu1 %497  ;;  %v481_v25 = vpop.permute.xlu0 %480 }
  0xb4   : > { %v488_v26 = vmul.f32 %v481_v25, %v474_v22  ;;  %v489_v27 = vmul.f32 %v481_v25, %v475_v23  ;;  %v598_v25 = vperm.slane %v1950_v4, 1 }
  0xb6   : > { %v500_v29 = vadd.f32 %v494_v18, %v488_v26  ;;  %v501_v30 = vadd.f32 %v494_v18, %v489_v27  ;;  %v599_v26 = vperm.slane %v1955_v7, 1 }
  0xb8   : > { %v512_v33 = vmul.f32 %v506_v28, %v500_v29  ;;  %v513_v34 = vmul.f32 %v506_v28, %v501_v30 }
  0xbb   : > { %v486_v35 = vpop.permute.xlu0 %485 }
  0xbc   : > { %v518_v40 = vpop.permute.xlu1 %517  ;;  %v490_v41 = vmul.f32 %v486_v35, %v476_v31  ;;  %v491_v42 = vmul.f32 %v486_v35, %v477_v32 }
  0xbd   : > { %v1871_v43 = vadd.f32 %v518_v40, %v512_v33  ;;  %v1873_v36 = vadd.f32 %v518_v40, %v513_v34 }
  0xbe   : > { %v502_v38 = vadd.f32 %v498_v24, %v490_v41  ;;  %v503_v44 = vadd.f32 %v498_v24, %v491_v42 }
  0xbf   : > { %552 = vrot.lane.b32.xlu1 %v1873_v36, %s1639_s18  ;;  %548 = vrot.lane.b32.xlu2 %v1871_v43, %s1639_s18  ;;  %v545_v20 = vmul.f32 %v537_v50, %v1873_v36 }
  0xc0   : > { %v514_v37 = vmul.f32 %v510_v45, %v502_v38  ;;  %v515_v39 = vmul.f32 %v510_v45, %v503_v44 }
  0xc2   : > { %v1877_v46 = vadd.f32 %v522_v19, %v514_v37  ;;  %v1880_v47 = vadd.f32 %v522_v19, %v515_v39  ;;  %v544_v19 = vmul.f32 %v537_v50, %v1871_v43 }
  0xc3   : > { %v571_v56 = vpop.permute.xlu0 %570 }
  0xc4   : > { %550 = vrot.lane.b32.xlu0 %v1877_v46, %s1639_s18 }
  0xc5   : > { %v1908_v49 = vpop.permute.xlu1 %541 }
  0xc6   : > { %v546_v32 = vmul.f32 %v1908_v49, %v1877_v46  ;;  %v547_v33 = vmul.f32 %v1908_v49, %v1880_v47 }
  0xc7   : > { %587 = vrot.lane.b32.xlu1 %v1877_v46, %s1640_s17  ;;  %554 = vrot.lane.b32.xlu2 %v1880_v47, %s1639_s18 }
  0xc9   : > { %v1931_v55 = vpop.permute.xlu2 %749 }
  0xcc   : > { %589 = vrot.lane.b32.xlu0 %v1873_v36, %s1640_s17  ;;  %v610_v58 = vpop.permute.xlu0 %609 }
  0xce   : > { %v1915_v51 = vpop.permute.xlu1 %574 }
  0xcf   : > { %622 = vrot.lane.b32.xlu1 %v1877_v46, %s1641_s25  ;;  %591 = vrot.lane.b32.xlu2 %v1880_v47, %s1640_s17 }
  0xd4   : > { %659 = vrot.lane.b32.xlu0 %v1873_v36, %s1642_s26  ;;  %v606_v62 = vpop.permute.xlu0 %605 }
  0xd7   : > { %620 = vrot.lane.b32.xlu1 %v1871_v43, %s1641_s25  ;;  %585 = vrot.lane.b32.xlu2 %v1871_v43, %s1640_s17  ;;  %v1925_v54 = vpop.permute.xlu1 %644 }
  0xdc   : > { %731 = vrot.lane.b32.xlu0 %v1880_v47, %s1643_s27 }
  0xdd   : > { %v1957_v9 = vpop.permute.xlu0 %640 }
  0xdf   : > { %657 = vrot.lane.b32.xlu1 %v1877_v46, %s1642_s26  ;;  %626 = vrot.lane.b32.xlu2 %v1880_v47, %s1641_s25 }
  0xe0   : > { %v1933_v57 = vpop.permute.xlu1 %679 }
  0xe4   : > { %725 = vrot.lane.b32.xlu0 %v1871_v43, %s1643_s27 }
  0xe7   : > { %692 = vrot.lane.b32.xlu1 %v1877_v46, %s1644_s22  ;;  %624 = vrot.lane.b32.xlu2 %v1873_v36, %s1641_s25  ;;  %s1573_s25 = scalar_lea.hbm %s2202_s8, 64 }
  0xe8   : > { %v1938_v60 = vpop.permute.xlu1 %675 }
  0xec   : > { %766 = vrot.lane.b32.xlu0 %v1880_v47, %s1646_s28 }
  0xef   : > { %694 = vrot.lane.b32.xlu1 %v1873_v36, %s1644_s22  ;;  %661 = vrot.lane.b32.xlu2 %v1880_v47, %s1642_s26 }
  0xf1   : > { %v1942_v63 = vpop.permute.xlu1 %710 }
  0xf4   : > { %760 = vrot.lane.b32.xlu0 %v1871_v43, %s1646_s28 }
  0xf7   : > { %729 = vrot.lane.b32.xlu1 %v1873_v36, %s1643_s27  ;;  %655 = vrot.lane.b32.xlu2 %v1871_v43, %s1642_s26  ;;  %s2137_s26 = scalar_lea.vmem [#allocation8], %s1290_s4 }
  0xfc   : > { %801 = vrot.lane.b32.xlu0 %v1880_v47, %s1647_s19 }
  0xff   : > { %764 = vrot.lane.b32.xlu1 %v1873_v36, %s1646_s28  ;;  %696 = vrot.lane.b32.xlu2 %v1880_v47, %s1644_s22 }
 0x104   : > { %795 = vrot.lane.b32.xlu0 %v1871_v43, %s1647_s19 }
 0x107   : > { %745 = vperm.xlu1 %1423, %v1824_v6   ;;  %690 = vrot.lane.b32.xlu2 %v1871_v43, %s1644_s22 }
 0x10c   : > { %819 = vperm.xlu0 %1425, %v1827_v8  }
 0x10f   : > { %799 = vrot.lane.b32.xlu1 %v1873_v36, %s1647_s19  ;;  %727 = vrot.lane.b32.xlu2 %v1877_v46, %s1643_s27  ;;  %s1311_s27 = sshll.u32 %s1723_s13, 5 }
 0x110   : > { %1426 = vset.pattern.permute.xlu1 %v1645_v48  ;;  %s1157_s4 = scalar_lea.hbm %s2202_s8, %s1311_s27 }
 0x111   : > { %s1160_s20 = sshll.u32 %s1157_s4, 4  ;;  %s2152_s20 = int_to_ptr.hbm [resolvable:$true] %s1160_s20 }
 0x112   : > { %s1567_s15 = sshra.s32 %s2152_s20, 4  ;;  %s1568_s15 = int_to_ptr.hbm [resolvable:$true] %s1567_s15 }
 0x113   : > { %p1574_p11 = scmp.lt.s32.totalorder %s1568_s15, %s2202_s8 }
 0x114   : > { %1428 = vset.pattern.permute.xlu0 %v1634_v5 }
 0x117   : > { %815 = vperm.xlu1 %1426, %v1824_v6   ;;  %762 = vrot.lane.b32.xlu2 %v1877_v46, %s1646_s28 }
 0x119   : > { %v549_v59 = vpop.permute.xlu2 %548 }
 0x11f   : > { %1427 = vset.pattern.permute.xlu1 %v1634_v5  ;;  %797 = vrot.lane.b32.xlu2 %v1877_v46, %s1647_s19 }
 0x121   : > { %v555_v61 = vpop.permute.xlu2 %554 }
 0x127   : > { %784 = vperm.xlu2 %1424, %v1827_v8   ;;  %v564_v8 = vperm.slane %v1955_v7, 0 }
 0x129   : > { %v592_v2 = vpop.permute.xlu2 %591 }
 0x12f   : > { %780 = vperm.xlu2 %1424, %v1824_v6  }
 0x131   : > { %v553_v11 = vpop.permute.xlu1 %552  ;;  %v586_v16 = vpop.permute.xlu2 %585 }
 0x132   : > { %v559_v14 = vsel %vm558_vm7, %v549_v59, %v553_v11  ;;  %v561_v15 = vsel %vm558_vm7, %v553_v11, %v549_v59 }
 0x133   : > { %v565_v17 = vmul.f32 %v563_v10, %v561_v15  ;;  %v566_v18 = vmul.f32 %v564_v8, %v559_v14 }
 0x135   : > { %v577_v21 = vmul.f32 %v571_v56, %v565_v17  ;;  %v578_v22 = vmul.f32 %v571_v56, %v566_v18  ;;  %v835_v56 = vadd.f32 %v1880_v47, %v1877_v46  ;;  %v633_v17 = vperm.slane %v1950_v4, 2 }
 0x136   : > { %v551_v24 = vpop.permute.xlu0 %550  ;;  %v634_v18 = vperm.slane %v1955_v7, 2 }
 0x137   : > { %v581_v23 = vadd.f32 %v577_v21, %v544_v19  ;;  %v582_v6 = vadd.f32 %v578_v22, %v545_v20  ;;  %v560_v27 = vsel %vm558_vm7, %v551_v24, %v555_v61  ;;  %v562_v28 = vsel %vm558_vm7, %v555_v61, %v551_v24  ;;  %1429 = vset.pattern.permute.xlu2 %v1634_v5 }
 0x138   : > { %v567_v29 = vmul.f32 %v563_v10, %v562_v28  ;;  %v568_v30 = vmul.f32 %v564_v8, %v560_v27 }
 0x139   : > { %v588_v31 = vpop.permute.xlu1 %587  ;;  %v1985_v40 = vpop.permute.xlu2 %626 }
 0x13a   : > { %v595_v34 = vsel %vm593_vm8, %v588_v31, %v592_v2  ;;  %v597_v35 = vsel %vm593_vm8, %v592_v2, %v588_v31  ;;  %v579_v41 = vmul.f32 %v1915_v51, %v567_v29  ;;  %v580_v42 = vmul.f32 %v1915_v51, %v568_v30 }
 0x13b   : > { %v602_v38 = vmul.f32 %v598_v25, %v597_v35  ;;  %v603_v44 = vmul.f32 %v599_v26, %v595_v34  ;;  %v832_v30 = vadd.f32 %v1873_v36, %v1871_v43 }
 0x13c   : > { %v583_v45 = vadd.f32 %v579_v41, %v546_v32  ;;  %v584_v37 = vadd.f32 %v580_v42, %v547_v33  ;;  %v668_v32 = vperm.slane %v1950_v4, 3  ;;  %v669_v33 = vperm.slane %v1955_v7, 3 }
 0x13d   : > { %v614_v39 = vmul.f32 %v610_v58, %v602_v38  ;;  %v615_v48 = vmul.f32 %v610_v58, %v603_v44 }
 0x13e   : > { %v590_v52 = vpop.permute.xlu0 %589 }
 0x13f   : > { %v1989_v50 = vadd.f32 %v614_v39, %v583_v45  ;;  %v1991_v49 = vadd.f32 %v615_v48, %v584_v37  ;;  %v594_v59 = vsel %vm593_vm8, %v586_v16, %v590_v52  ;;  %v596_v51 = vsel %vm593_vm8, %v590_v52, %v586_v16 }
 0x140   : > { %v600_v61 = vmul.f32 %v598_v25, %v596_v51  ;;  %v601_v0 = vmul.f32 %v599_v26, %v594_v59  ;;  %v703_v39 = vperm.slane %v1950_v4, 5  ;;  %v704_v48 = vperm.slane %v1955_v7, 5 }
 0x141   : > { %v623_v2 = vpop.permute.xlu1 %622  ;;  %836 = vadd.xlane.f32.xlu1 %v835_v56  ;;  %v625_v10 = vpop.permute.xlu2 %624 }
 0x142   : > { %v612_v58 = vmul.f32 %v606_v62, %v600_v61  ;;  %v613_v8 = vmul.f32 %v606_v62, %v601_v0 }
 0x144   : > { %v616_v11 = vadd.f32 %v612_v58, %v581_v23  ;;  %v617_v14 = vadd.f32 %v613_v8, %v582_v6 }
 0x146   : > { %v660_v15 = vpop.permute.xlu0 %659 }
 0x149   : > { %v621_v19 = vpop.permute.xlu1 %620  ;;  %v662_v21 = vpop.permute.xlu2 %661 }
 0x14a   : > { %v629_v16 = vsel %vm628_vm9, %v621_v19, %v625_v10  ;;  %v631_v20 = vsel %vm628_vm9, %v625_v10, %v621_v19 }
 0x14b   : > { %v635_v22 = vmul.f32 %v633_v17, %v631_v20  ;;  %v636_v24 = vmul.f32 %v634_v18, %v629_v16  ;;  %v630_v20 = vsel %vm628_vm9, %v623_v2, %v1985_v40 }
 0x14d   : > { %v647_v62 = vmul.f32 %v1957_v9, %v635_v22  ;;  %v648_v23 = vmul.f32 %v1957_v9, %v636_v24  ;;  %v632_v22 = vsel %vm628_vm9, %v1985_v40, %v623_v2  ;;  %v738_v2 = vperm.slane %v1950_v4, 6 }
 0x14e   : > { %v732_v26 = vpop.permute.xlu0 %731 }
 0x14f   : > { %v651_v6 = vadd.f32 %v647_v62, %v616_v11  ;;  %v652_v25 = vadd.f32 %v648_v23, %v617_v14 }
 0x151   : > { %v658_v27 = vpop.permute.xlu1 %657  ;;  %v656_v28 = vpop.permute.xlu2 %655 }
 0x152   : > { %v664_v9 = vsel %vm663_vm10, %v656_v28, %v660_v15  ;;  %v666_v35 = vsel %vm663_vm10, %v660_v15, %v656_v28  ;;  %v667_v62 = vsel %vm663_vm10, %v662_v21, %v658_v27 }
 0x153   : > { %v670_v41 = vmul.f32 %v668_v32, %v666_v35  ;;  %v671_v42 = vmul.f32 %v669_v33, %v664_v9  ;;  %v672_v28 = vmul.f32 %v668_v32, %v667_v62  ;;  %v739_v35 = vperm.slane %v1955_v7, 6 }
 0x155   : > { %v682_v45 = vmul.f32 %v1938_v60, %v670_v41  ;;  %v683_v37 = vmul.f32 %v1938_v60, %v671_v42  ;;  %v684_v42 = vmul.f32 %v1933_v57, %v672_v28 }
 0x156   : > { %v2008_v29 = vpop.permute.xlu0 %725 }
 0x157   : > { %v686_v0 = vadd.f32 %v682_v45, %v651_v6  ;;  %v687_v10 = vadd.f32 %v683_v37, %v652_v25  ;;  %v637_v6 = vmul.f32 %v633_v17, %v632_v22  ;;  %v638_v25 = vmul.f32 %v634_v18, %v630_v20 }
 0x158   : > { %833 = vadd.xlane.f32.xlu2 %v832_v30 }
 0x159   : > { %v693_v31 = vpop.permute.xlu1 %692  ;;  %v697_v34 = vpop.permute.xlu2 %696  ;;  %v649_v41 = vmul.f32 %v1925_v54, %v637_v6 }
 0x15a   : > { %v700_v9 = vsel %vm698_vm11, %v693_v31, %v697_v34  ;;  %v702_v40 = vsel %vm698_vm11, %v697_v34, %v693_v31 }
 0x15b   : > { %v708_v32 = vmul.f32 %v704_v48, %v702_v40 }
 0x15e   : > { %v2019_v38 = vpop.permute.xlu0 %766 }
 0x161   : > { %v695_v44 = vpop.permute.xlu1 %694  ;;  %v691_v52 = vpop.permute.xlu2 %690 }
 0x162   : > { %v699_v56 = vsel %vm698_vm11, %v691_v52, %v695_v44  ;;  %v701_v59 = vsel %vm698_vm11, %v695_v44, %v691_v52  ;;  %v653_v52 = vadd.f32 %v649_v41, %v1989_v50 }
 0x163   : > { %v705_v51 = vmul.f32 %v703_v39, %v699_v56  ;;  %v706_v61 = vmul.f32 %v704_v48, %v701_v59 }
 0x164   : > { %v688_v48 = vadd.f32 %v684_v42, %v653_v52 }
 0x165   : > { %v717_v58 = vmul.f32 %v1942_v63, %v705_v51  ;;  %v718_v8 = vmul.f32 %v1942_v63, %v706_v61  ;;  %v665_v63 = vsel %vm663_vm10, %v658_v27, %v662_v21  ;;  %v650_v21 = vmul.f32 %v1925_v54, %v638_v25 }
 0x166   : > { %v2032_v60 = vpop.permute.xlu0 %760  ;;  %v673_v30 = vmul.f32 %v669_v33, %v665_v63  ;;  %v707_v27 = vmul.f32 %v703_v39, %v700_v9  ;;  %v773_v39 = vperm.slane %v1950_v4, 7  ;;  %v1434_v4 = vld [vmem:[%s2197_s3 + $0x10] ss:$0 sm:$0xff] }
 0x167   : > { %v2034_v11 = vadd.f32 %v717_v58, %v686_v0  ;;  %v2036_v14 = vadd.f32 %v718_v8, %v687_v10  ;;  %v654_v54 = vadd.f32 %v650_v21, %v1991_v49 }
 0x168   : > { %v685_v31 = vmul.f32 %v1933_v57, %v673_v30  ;;  %v719_v56 = vmul.f32 %v1920_v53, %v707_v27  ;;  %v774_v57 = vperm.slane %v1955_v7, 7  ;;  %v1435_v7 = vld [vmem:[%s2197_s3 + $0x18] ss:$0 sm:$0xff] }
 0x169   : > { %v730_v15 = vpop.permute.xlu1 %729  ;;  %v728_v19 = vpop.permute.xlu2 %727 }
 0x16a   : > { %v735_v17 = vsel %vm733_vm12, %v728_v19, %v732_v26  ;;  %v737_v18 = vsel %vm733_vm12, %v732_v26, %v728_v19  ;;  %v720_v26 = vmul.f32 %v1920_v53, %v708_v32  ;;  %v689_v59 = vadd.f32 %v685_v31, %v654_v54 }
 0x16b   : > { %v742_v44 = vmul.f32 %v738_v2, %v735_v17  ;;  %v743_v45 = vmul.f32 %v739_v35, %v737_v18  ;;  %v723_v61 = vadd.f32 %v719_v56, %v688_v48  ;;  %v736_v58 = vsel %vm733_vm12, %v730_v15, %v2008_v29 }
 0x16c   : > { %v724_v0 = vadd.f32 %v720_v26, %v689_v59  ;;  %v741_v9 = vmul.f32 %v739_v35, %v736_v58 }
 0x16d   : > { %v754_v51 = vmul.f32 %v1931_v55, %v742_v44  ;;  %v755_v50 = vmul.f32 %v1931_v55, %v743_v45 }
 0x16e   : > { %v802_v16 = vpop.permute.xlu0 %801 }
 0x16f   : > { %v758_v62 = vadd.f32 %v754_v51, %v723_v61 }
 0x171   : > { %v2044_v24 = vpop.permute.xlu1 %764  ;;  %v763_v23 = vpop.permute.xlu2 %762 }
 0x172   : > { %v770_v49 = vsel %vm768_vm13, %v763_v23, %v2019_v38  ;;  %v772_v53 = vsel %vm768_vm13, %v2019_v38, %v763_v23  ;;  %v734_v38 = vsel %vm733_vm12, %v2008_v29, %v730_v15  ;;  %v759_v23 = vadd.f32 %v755_v50, %v724_v0 }
 0x173   : > { %v777_v8 = vmul.f32 %v773_v39, %v770_v49  ;;  %v778_v19 = vmul.f32 %v774_v57, %v772_v53  ;;  %v769_v29 = vsel %vm768_vm13, %v2032_v60, %v2044_v24  ;;  %v771_v15 = vsel %vm768_vm13, %v2044_v24, %v2032_v60 }
 0x174   : > { %v775_v31 = vmul.f32 %v773_v39, %v769_v29  ;;  %v776_v44 = vmul.f32 %v774_v57, %v771_v15 }
 0x176   : > { %v796_v33 = vpop.permute.xlu0 %795 }
 0x179   : > { %v746_v34 = vpop.permute.xlu1 %745  ;;  %v798_v37 = vpop.permute.xlu2 %797 }
 0x17a   : > { %v805_v55 = vsel %vm803_vm14, %v798_v37, %v802_v16  ;;  %v807_v10 = vsel %vm803_vm14, %v802_v16, %v798_v37  ;;  %v740_v16 = vmul.f32 %v738_v2, %v734_v38  ;;  %v753_v27 = vmul.f32 %v746_v34, %v741_v9 }
 0x17b   : > { %v812_v6 = vmul.f32 %v1434_v4, %v805_v55  ;;  %v813_v25 = vmul.f32 %v1435_v7, %v807_v10  ;;  %v1436_v55 = vld [vmem:[%s2199_s5] ss:$0 sm:$0xff] }
 0x17c   : > { %v752_v18 = vmul.f32 %v746_v34, %v740_v16  ;;  %v757_v37 = vadd.f32 %v753_v27, %v2036_v14  ;;  %v830_v16 = vld [vmem:[#allocation7] sm:$0xff] }
 0x17e   : > { %v820_v22 = vpop.permute.xlu0 %819  ;;  %v756_v45 = vadd.f32 %v752_v18, %v2034_v11  ;;  %v1649_v11 = vmov 256.0   ;;  %v1007_v18 = vld [vmem:[%s2200_s6] sm:$0xff] }
 0x17f   : > { %v824_v40 = vmul.f32 %v820_v22, %v812_v6  ;;  %v825_v41 = vmul.f32 %v820_v22, %v813_v25  ;;  %1443 = vrcp.f32 %v1649_v11  ;;  %v831_v25 = vld [vmem:[#allocation7 + $0x8] sm:$0xff]  ;;  %1012 = vperm.xlu1 %1427, %v1007_v18  }
 0x181   : > { %v800_v20 = vpop.permute.xlu1 %799  ;;  %v785_v63 = vpop.permute.xlu2 %784 }
 0x182   : > { %v789_v28 = vmul.f32 %v785_v63, %v777_v8  ;;  %v790_v30 = vmul.f32 %v785_v63, %v778_v19  ;;  %v804_v2 = vsel %vm803_vm14, %v796_v33, %v800_v20  ;;  %v806_v35 = vsel %vm803_vm14, %v800_v20, %v796_v33 }
 0x183   : > { %v810_v34 = vmul.f32 %v1434_v4, %v804_v2  ;;  %v811_v52 = vmul.f32 %v1435_v7, %v806_v35  ;;  %v1009_v35 = vld [vmem:[%s2201_s7] sm:$0x7] }
 0x184   : > { %v793_v21 = vadd.f32 %v789_v28, %v758_v62  ;;  %v794_v17 = vadd.f32 %v790_v30, %v759_v23  ;;  %v1008_v30 = vld [vmem:[%s2200_s6 + $0x8] sm:$0xff] }
 0x185   : > { %v1444_v14 = vpop.eup %1443 }
 0x186   : > { %v828_v32 = vadd.f32 %v824_v40, %v793_v21  ;;  %v829_v42 = vadd.f32 %v825_v41, %v794_v17  ;;  %v839_v57 = vmul.f32 256.0, %v1444_v14  ;;  %vm843_vm15 = vweird.f32 %v1444_v14 }
 0x187   : > { %1433 = vset.pattern.permute.xlu1 %v1632_v1 }
 0x188   : > { %963 = vmatpush.msra.mxu0 %v828_v32  ;;  %1312 = vmatpush.msra.mxu2 %v828_v32  ;;  %v840_v51 = vsub.f32 1.0, %v839_v57 }
 0x189   : > { %986 = vmatpush.msra.mxu1 %v829_v42  ;;  %1314 = vmatpush.msra.mxu3 %v829_v42  ;;  %v816_v60 = vpop.permute.xlu1 %815  ;;  %v781_v24 = vpop.permute.xlu2 %780 }
 0x18a   : > { %v787_v54 = vmul.f32 %v781_v24, %v775_v31  ;;  %v788_v56 = vmul.f32 %v781_v24, %v776_v44  ;;  %v822_v26 = vmul.f32 %v816_v60, %v810_v34  ;;  %v823_v48 = vmul.f32 %v816_v60, %v811_v52  ;;  %1078 = vperm.xlu1 %1433, %v1009_v35  }
 0x18b   : > { %v841_v50 = vmul.f32 %v1444_v14, %v840_v51 }
 0x18c   : > { %v791_v3 = vadd.f32 %v787_v54, %v756_v45  ;;  %v792_v33 = vadd.f32 %v788_v56, %v757_v37 }
 0x18d   : > { %v842_v49 = vadd.f32 %v1444_v14, %v841_v50 }
 0x18e   : > { %v826_v39 = vadd.f32 %v822_v26, %v791_v3  ;;  %v827_v59 = vadd.f32 %v823_v48, %v792_v33 }
 0x18f   : > { %v844_v53 = vsel %vm843_vm15, %v1444_v14, %v842_v49 }
 0x190   : > { %964 = vmatpush.msra.mxu0 %v826_v39  ;;  %1313 = vmatpush.msra.mxu2 %v826_v39 }
 0x191   : > { %987 = vmatpush.msra.mxu1 %v827_v59  ;;  %1315 = vmatpush.msra.mxu3 %v827_v59 }
 0x192   : > { %1299 = vmatmul.msk.f32.vlgmr.msra.gmra.mxu2 %vm942_vm2, %v831_v25  ;;  %1301 = vmatmul.msk.f32.vlgmr.msra.gmra.mxu3 %vm942_vm2, %v831_v25 }
 0x193   : > { %1298 = vmatmul.msk.f32.vlgmr.msra.gmra.mxu0 %vm942_vm2, %v830_v16  ;;  %1300 = vmatmul.msk.f32.vlgmr.msra.gmra.mxu1 %vm942_vm2, %v830_v16 }
 0x1b4   : > { %v837_v4 = vpop.xlane.xlu1 %836 }
 0x1b5   : > { %v846_v7 = vmul.f32 %v844_v53, %v837_v4 }
 0x1b7   : > { %v852_v10 = vrot.slane %v846_v7, 7  ;;  %v878_v19 = vrot.slane %v846_v7, 1  ;;  %v865_v6 = vmul.f32 %v1436_v55, %v846_v7 }
 0x1b9   : > { %v882_v40 = vsel %vm876_vm1, %v878_v19, 0.0 }
 0x1cb   : > { %v834_v61 = vpop.xlane.xlu2 %833 }
 0x1cc   : > { %v845_v0 = vmul.f32 %v844_v53, %v834_v61 }
 0x1ce   : > { %v851_v38 = vrot.slane %v845_v0, 7  ;;  %v877_v58 = vrot.slane %v845_v0, 1  ;;  %v864_v8 = vmul.f32 %v1436_v55, %v845_v0 }
 0x1d0   : > { %868 = vrot.lane.b32.xlu0 %v864_v8, %s1644_s22  ;;  %v856_v20 = vsel %vm850_vm0, 0.0, %v851_v38  ;;  %v853_v22 = vsel %vm850_vm0, %v851_v38, %v852_v10  ;;  %v879_v63 = vsel %vm876_vm1, %v877_v58, %v878_v19 }
 0x1d1   : > { %v860_v62 = vmul.f32 %v1436_v55, %v856_v20  ;;  %v861_v23 = vmul.f32 %v1436_v55, %v853_v22 }
 0x1d8   : > { %870 = vrot.lane.b32.xlu0 %v865_v6, %s1644_s22  ;;  %s1569_s22 = scalar_lea.hbm %s1568_s15, 32 }
 0x1d9   : > { %p1570_p1 = scmp.ne.s32.totalorder %s1568_s15, %s1569_s22  ;;  %p1575_p2 = scmp.lt.s32.totalorder %s1573_s25, %s1569_s22 }
 0x1db   : > { %p1571_p4 = pnand %p1570_p1, %p1768_p3  ;;  %p1576_p9 = por %p1575_p2, %p1574_p11 }
 0x1dd   : > { %p1572_p8 = pneg %p1571_p4 }
 0x1df   : > { %p1577_p10 = pnand %p1576_p9, %p1572_p8 }
 0x1e0   : > { %883 = vrot.lane.b32.xlu0 %v1436_v55, %s1650_s2  ;;  %s1158_s2 = sshll.u32 %s2137_s26, 4  ;;  %s2148_s2 = int_to_ptr.vmem [resolvable:$true] %s1158_s2 }
 0x1e8   : > { %1017 = vperm.xlu0 %1428, %v1008_v30  }
 0x215   : > { %v969_v7 = vpop.f32.mrf.mxu2  ;;  %v992_v0 = vpop.f32.mrf.mxu3 }
 0x242   : > { %v869_v28 = vpop.permute.xlu0 %868 }
 0x243   : > { %v874_v21 = vadd.f32 %v869_v28, %v860_v62  ;;  %v989_v62 = vpop.f32.mrf.mxu1 }
 0x24a   : > { %v871_v9 = vpop.permute.xlu0 %870 }
 0x24b   : > { %v875_v17 = vadd.f32 %v871_v9, %v861_v23 }
 0x252   : > { %v884_v41 = vpop.permute.xlu0 %883 }
 0x253   : > { %v886_v29 = vmul.f32 %v884_v41, %v879_v63  ;;  %v887_v15 = vmul.f32 %v884_v41, %v882_v40 }
 0x255   : > { %v888_v27 = vadd.f32 %v886_v29, %v874_v21  ;;  %v889_v32 = vadd.f32 %v887_v15, %v875_v17  ;;  %v1461_v17 = vld [vmem:[%s1804_s23] sm:$0xff]  ;;  %v1462_v15 = vld [vmem:[%s1804_s23 + $0x8] sm:$0xff]  ;;  %s1141_s23 = scalar_lea.sflag [#allocation4], %s1798_s24 }
 0x257   : > { %v1296_v42 = vmul.f32 -1.442695, %v888_v27  ;;  %v1297_v2 = vmul.f32 -1.442695, %v889_v32 }
 0x259   : > { %1445 = vpow2.f32 %v1296_v42 }
 0x25a   : > { %1447 = vpow2.f32 %v1297_v2 }
 0x25f   : > { %v1446_v31 = vpop.eup %1445 }
 0x260   : > { %v1448_v44 = vpop.eup %1447  ;;  %v896_v45 = vadd.f32 1.0, %v1446_v31 }
 0x261   : > { %v897_v37 = vadd.f32 1.0, %v1448_v44 }
 0x262   : > { %1449 = vrcp.f32 %v896_v45  ;;  %v909_v56 = vand.u32 2147483648, %v896_v45  ;;  %v907_v3 = vand.u32 2147483647, %v896_v45  ;;  %vm903_vm5 = vweird.f32 %v896_v45 }
 0x263   : > { %1451 = vrcp.f32 %v897_v37  ;;  %v924_v33 = vand.u32 2147483648, %v897_v37  ;;  %v922_v59 = vand.u32 2147483647, %v897_v37  ;;  %vm918_vm7 = vweird.f32 %v897_v37 }
 0x264   : > { %v910_v14 = vor.u32 1.1754944e-38, %v909_v56  ;;  %vm908_vm8 = vcmp.eq.f32.partialorder %v907_v3, 8.507059e+37 }
 0x265   : > { %v925_v50 = vor.u32 1.1754944e-38, %v924_v33  ;;  %vm923_vm10 = vcmp.eq.f32.partialorder %v922_v59, 8.507059e+37 }
 0x268   : > { %v1450_v60 = vpop.eup %1449 }
 0x269   : > { %v1452_v24 = vpop.eup %1451  ;;  %v899_v34 = vmul.f32 %v1450_v60, %v896_v45  ;;  %vm904_vm3 = vweird.f32 %v1450_v60 }
 0x26a   : > { %v914_v52 = vmul.f32 %v1452_v24, %v897_v37  ;;  %vm919_vm4 = vweird.f32 %v1452_v24  ;;  %vm905_vm6 = vmor %vm903_vm5, %vm904_vm3 }
 0x26b   : > { %v900_v54 = vsub.f32 1.0, %v899_v34  ;;  %vm920_vm9 = vmor %vm918_vm7, %vm919_vm4 }
 0x26c   : > { %v915_v26 = vsub.f32 1.0, %v914_v52 }
 0x26d   : > { %v901_v48 = vmul.f32 %v1450_v60, %v900_v54 }
 0x26e   : > { %v916_v39 = vmul.f32 %v1452_v24, %v915_v26 }
 0x26f   : > { %v902_v11 = vadd.f32 %v1450_v60, %v901_v48 }
 0x270   : > { %v917_v57 = vadd.f32 %v1452_v24, %v916_v39 }
 0x271   : > { %v906_v51 = vsel %vm905_vm6, %v1450_v60, %v902_v11 }
 0x272   : > { %v911_v49 = vsel %vm908_vm8, %v910_v14, %v906_v51  ;;  %v921_v53 = vsel %vm920_vm9, %v1452_v24, %v917_v57 }
 0x273   : > { %930 = vperm.xlu0 %1428, %v911_v49   ;;  %v926_v4 = vsel %vm923_vm10, %v925_v50, %v921_v53 }
 0x274   : > { %935 = vperm.xlu2 %1429, %v926_v4  }
 0x27b   : > { %1430 = vset.pattern.permute.xlu0 %v1632_v1 }
 0x27c   : > { %1431 = vset.pattern.permute.xlu2 %v1632_v1  ;;  %1050 = vperm.xlu0 %1430, %v1007_v18  }
 0x27d   : > { %1054 = vperm.xlu2 %1431, %v1008_v30   ;;  %v1013_v30 = vpop.permute.xlu1 %1012 }
 0x285   : > { %1432 = vset.pattern.permute.xlu2 %v1634_v5 }
 0x286   : > { %1042 = vperm.xlu2 %1432, %v1009_v35  }
 0x2ce   : > { %v936_v61 = vpop.permute.xlu2 %935 }
 0x2cf   : > { %v940_v55 = vmul.f32 %v936_v61, %v1877_v46  ;;  %v941_v10 = vmul.f32 %v936_v61, %v1880_v47  ;;  %v1018_v46 = vpop.permute.xlu0 %1017  ;;  %v966_v47 = vpop.f32.mrf.mxu0 }
 0x2d1   : > { %v970_v38 = vadd.f32 %v969_v7, %v940_v55  ;;  %v993_v58 = vadd.f32 %v992_v0, %v941_v10 }
 0x2d3   : > { %vm997_vm11 = vcmp.ge.f32.partialorder %v970_v38, 0.0  ;;  %v1001_v8 = vmul.f32 0.2, %v970_v38  ;;  %vm998_vm12 = vcmp.ge.f32.partialorder %v993_v58, 0.0  ;;  %v1002_v1 = vmul.f32 0.2, %v993_v58 }
 0x2d5   : > { %v1005_v19 = vsel %vm997_vm11, %v970_v38, %v1001_v8  ;;  %v1006_v20 = vsel %vm998_vm12, %v993_v58, %v1002_v1 }
 0x2d6   : > { %v1127_v5 = vadd.f32 %v1005_v19, %v1835_v12  ;;  %v1128_v22 = vadd.f32 %v1006_v20, %v1840_v13  ;;  %v1022_v9 = vmul.f32 %v1018_v46, %v1005_v19 }
 0x2d7   : > { %v1055_v16 = vpop.permute.xlu2 %1054 }
 0x2d8   : > { %1131 = vst [vmem:[%s2137_s26 + $0x10] sm:$0xff] %v1127_v5  ;;  %v1059_v27 = vmul.f32 %v1055_v16, %v1005_v19  ;;  %v1060_v32 = vmul.f32 %v1055_v16, %v1006_v20 }
 0x2d9   : > { %1132 = vst [vmem:[%s2137_s26 + $0x18] sm:$0xff] %v1128_v22 }
 0x2e5   : > { %v931_v63 = vpop.permute.xlu0 %930 }
 0x2e6   : > { %v938_v23 = vmul.f32 %v931_v63, %v1871_v43  ;;  %v939_v6 = vmul.f32 %v931_v63, %v1873_v36  ;;  %v1023_v43 = vmul.f32 %v1018_v46, %v1006_v20 }
 0x2e8   : > { %v967_v12 = vadd.f32 %v966_v47, %v938_v23  ;;  %v990_v25 = vadd.f32 %v989_v62, %v939_v6 }
 0x2ea   : > { %vm995_vm13 = vcmp.ge.f32.partialorder %v967_v12, 0.0  ;;  %v999_v13 = vmul.f32 0.2, %v967_v12  ;;  %vm996_vm14 = vcmp.ge.f32.partialorder %v990_v25, 0.0  ;;  %v1000_v28 = vmul.f32 0.2, %v990_v25 }
 0x2ec   : > { %v1003_v36 = vsel %vm995_vm13, %v967_v12, %v999_v13  ;;  %v1004_v40 = vsel %vm996_vm14, %v990_v25, %v1000_v28 }
 0x2ed   : > { %v1020_v41 = vmul.f32 %v1013_v30, %v1003_v36  ;;  %v1021_v21 = vmul.f32 %v1013_v30, %v1004_v40  ;;  %v1125_v29 = vadd.f32 %v1461_v17, %v1003_v36  ;;  %v1126_v18 = vadd.f32 %v1462_v15, %v1004_v40 }
 0x2ee   : > { %v1051_v42 = vpop.permute.xlu0 %1050 }
 0x2ef   : > { %v1024_v2 = vadd.f32 %v1022_v9, %v1020_v41  ;;  %v1031_v35 = vadd.f32 %v1023_v43, %v1021_v21  ;;  %1129 = vst [vmem:[%s2137_s26] sm:$0xff] %v1125_v29  ;;  %v1057_v31 = vmul.f32 %v1051_v42, %v1003_v36  ;;  %v1058_v44 = vmul.f32 %v1051_v42, %v1004_v40 }
 0x2f0   : > { %1130 = vst [vmem:[%s2137_s26 + $0x8] sm:$0xff] %v1126_v18 }
 0x2f1   : > { %v1025_v45 = vrot.slane %v1024_v2, 4  ;;  %v1032_v37 = vrot.slane %v1031_v35, 4  ;;  %v1061_v60 = vadd.f32 %v1059_v27, %v1057_v31  ;;  %v1068_v24 = vadd.f32 %v1060_v32, %v1058_v44 }
 0x2f2   : > { %1580 = shalt.err (!%p1577_p10)
}
 0x2f3   : > { %s1651_s24 = smov 256   ;;  %v1026_v34 = vadd.f32 %v1025_v45, %v1024_v2  ;;  %v1033_v52 = vadd.f32 %v1032_v37, %v1031_v35  ;;  %v1062_v54 = vrot.slane %v1061_v60, 4  ;;  %v1069_v56 = vrot.slane %v1068_v24, 4  ;;  %v1043_v58 = vpop.permute.xlu2 %1042  ;;  %v1079_v8 = vpop.permute.xlu1 %1078 }
 0x2f4   : > { %1326 = dma.vmem_to_hbm [thread:$0]  (%p1768_p3), %s2148_s2, 512, %s2152_s20, %s1141_s23, %s1651_s24, %s1651_s24, %s1640_s17   ;;  %vm1136_vm7 = vcmask 1043456  }
 0x2f5   : > { %v1063_v26 = vadd.f32 %v1062_v54, %v1061_v60  ;;  %v1070_v48 = vadd.f32 %v1069_v56, %v1068_v24  ;;  %v1034_v3 = vrot.slane %v1033_v52, 2  ;;  %v1027_v33 = vrot.slane %v1026_v34, 2  ;;  %p394_p3 = scmp.lt.s32.totalorder %s1723_s13, 1 }
 0x2f7   : > { %v1064_v39 = vrot.slane %v1063_v26, 2  ;;  %v1071_v59 = vrot.slane %v1070_v48, 2  ;;  %v1035_v11 = vadd.f32 %v1034_v3, %v1033_v52  ;;  %v1028_v14 = vadd.f32 %v1027_v33, %v1026_v34  ;;  %s2221_s13 = smov (!%p394_p3, %s1723_s13), 1 }
 0x2f8   : > { %s1310_s21 = sshll.u32 %s2221_s13, 3 }
 0x2f9   : > { %v1036_v57 = vrot.slane %v1035_v11, 1  ;;  %v1029_v51 = vrot.slane %v1028_v14, 1  ;;  %v1065_v50 = vadd.f32 %v1064_v39, %v1063_v26  ;;  %v1072_v49 = vadd.f32 %v1071_v59, %v1070_v48  ;;  %s398_s19 = scalar_lea.vmem %s2203_s9, %s1310_s21 }
 0x2fb   : > { %v1037_v53 = vadd.f32 %v1036_v57, %v1035_v11  ;;  %v1030_v4 = vadd.f32 %v1029_v51, %v1028_v14  ;;  %v1066_v7 = vrot.slane %v1065_v50, 1  ;;  %v1073_v61 = vrot.slane %v1072_v49, 1 }
 0x2fd   : > { %v1039_v0 = vmax.f32 %v1037_v53, 0.0  ;;  %v1038_v55 = vmax.f32 %v1030_v4, 0.0  ;;  %v1067_v10 = vadd.f32 %v1066_v7, %v1065_v50  ;;  %v1074_v38 = vadd.f32 %v1073_v61, %v1072_v49 }
 0x2ff   : > { %v1075_v1 = vmax.f32 %v1067_v10, 0.0  ;;  %v1076_v19 = vmax.f32 %v1074_v38, 0.0  ;;  %v1045_v20 = vmul.f32 %v1043_v58, %v1038_v55  ;;  %v1046_v5 = vmul.f32 %v1043_v58, %v1039_v0 }
 0x301   : > { %v1081_v22 = vmul.f32 %v1079_v8, %v1075_v1  ;;  %v1082_v46 = vmul.f32 %v1079_v8, %v1076_v19 }
 0x303   : > { %v1083_v47 = vadd.f32 %v1081_v22, %v1045_v20  ;;  %v1084_v63 = vadd.f32 %v1082_v46, %v1046_v5 }
 0x305   : > { %v1302_v62 = vmul.f32 -1.442695, %v1083_v47  ;;  %v1303_v23 = vmul.f32 -1.442695, %v1084_v63 }
 0x307   : > { %1453 = vpow2.f32 %v1302_v62 }
 0x308   : > { %1455 = vpow2.f32 %v1303_v23 }
 0x30d   : > { %v1454_v6 = vpop.eup %1453 }
 0x30e   : > { %v1456_v12 = vpop.eup %1455  ;;  %v1091_v25 = vadd.f32 1.0, %v1454_v6 }
 0x30f   : > { %v1092_v13 = vadd.f32 1.0, %v1456_v12 }
 0x310   : > { %1457 = vrcp.f32 %v1091_v25  ;;  %v1104_v41 = vand.u32 2147483648, %v1091_v25  ;;  %v1102_v17 = vand.u32 2147483647, %v1091_v25  ;;  %vm1098_vm1 = vweird.f32 %v1091_v25 }
 0x311   : > { %1459 = vrcp.f32 %v1092_v13  ;;  %v1119_v21 = vand.u32 2147483648, %v1092_v13  ;;  %v1117_v15 = vand.u32 2147483647, %v1092_v13  ;;  %vm1113_vm3 = vweird.f32 %v1092_v13 }
 0x312   : > { %v1105_v42 = vor.u32 1.1754944e-38, %v1104_v41  ;;  %vm1103_vm5 = vcmp.eq.f32.partialorder %v1102_v17, 8.507059e+37 }
 0x313   : > { %v1120_v2 = vor.u32 1.1754944e-38, %v1119_v21  ;;  %vm1118_vm6 = vcmp.eq.f32.partialorder %v1117_v15, 8.507059e+37 }
 0x316   : > { %v1458_v28 = vpop.eup %1457 }
 0x317   : > { %v1460_v30 = vpop.eup %1459  ;;  %v1094_v16 = vmul.f32 %v1458_v28, %v1091_v25  ;;  %vm1099_vm15 = vweird.f32 %v1458_v28 }
 0x318   : > { %v1109_v9 = vmul.f32 %v1460_v30, %v1092_v13  ;;  %vm1114_vm0 = vweird.f32 %v1460_v30  ;;  %vm1100_vm2 = vmor %vm1098_vm1, %vm1099_vm15 }
 0x319   : > { %v1095_v43 = vsub.f32 1.0, %v1094_v16  ;;  %vm1115_vm4 = vmor %vm1113_vm3, %vm1114_vm0 }
 0x31a   : > { %v1110_v36 = vsub.f32 1.0, %v1109_v9 }
 0x31b   : > { %v1096_v40 = vmul.f32 %v1458_v28, %v1095_v43 }
 0x31c   : > { %v1111_v29 = vmul.f32 %v1460_v30, %v1110_v36 }
 0x31d   : > { %v1097_v18 = vadd.f32 %v1458_v28, %v1096_v40 }
 0x31e   : > { %v1112_v27 = vadd.f32 %v1460_v30, %v1111_v29 }
 0x31f   : > { %v1101_v32 = vsel %vm1100_vm2, %v1458_v28, %v1097_v18 }
 0x320   : > { %v1116_v35 = vsel %vm1115_vm4, %v1460_v30, %v1112_v27  ;;  %v1106_v31 = vsel %vm1103_vm5, %v1105_v42, %v1101_v32 }
 0x321   : > { %v1121_v44 = vsel %vm1118_vm6, %v1120_v2, %v1116_v35  ;;  %v1123_v37 = vmul.f32 2.0, %v1106_v31 }
 0x322   : > { %v1124_v45 = vmul.f32 2.0, %v1121_v44 }
 0x324   : > { %v1135_v60 = vrot.slane %v1124_v45, 4 }
 0x326   : > { %v1137_v24 = vsel %vm1136_vm7, %v1123_v37, %v1135_v60 }
 0x327   : > { %1139 = vst [vmem:[%s398_s19] sm:$0x77] %v1137_v24 }
 0x328 PF: > { %s1178_s4 = sand.u32 1, %s1611_s30   ;;  %p2214_p12 = scmp.ge.s32.totalorder %s1623_s12, 2 }
 0x329   : > { %s1179_s13 = scalar_lea.sflag [#allocation4], %s1178_s4 }
 0x32a   : > { %p1340_p13 = pnand %p2214_p12, %p1737_p6 }
 0x32c   : > { %p1341_p0 = pneg %p1340_p13 }
 0x32e   : > { %1606 = dma.done.wait (%p1341_p0), %s1179_s13, 512  }
 0x32f   : > { %1608 = vsyncadd (%p1341_p0), %s1179_s13, 4294966784  ;;  %s2215_s2 = sld [smem:[#allocation12_spill]]  ;;  %p24_p5 = scmp.ge.s32.totalorder %s1758_s14, 4  }
 0x330   : > { %s2216_s30 = smov %s1615_s10  ;;  %s2217_s10 = smov %s1619_s11 }
 0x331   : > { %s2219_s12 = smov %s1758_s14  ;;  %26 = sbr.rel (!%p24_p5) target bundleno = 9 (0x9), region = 117 }
 0x335   : > { %s2218_s11 = smov %s2215_s2 }
 0x336   :  { %1193 = vsyncpa [#allocation3], 1 }
 0x337   :  { %1195 = vsyncpa [#allocation3 + $0x1], 1 }
 0x338   :  { %1196 = vsyncpa [#allocation6], 1 }
 0x339   :  { %1197 = vsyncpa [#allocation4], 1 }
 0x33a   :  { %1199 = vsyncpa [#allocation4 + $0x1], 1 }

</bundles_post_ra>
